<compile_context>
chip_gen: v7x
topology: tpu7x:2x2x1
jax: 0.10.0
libtpu: 0.0.40
codegen_flags: <defaults>
</compile_context>

<pallas_src>
import jax
import jax.numpy as jnp
from jax.experimental import pallas as pl
from jax.experimental.pallas import tpu as pltpu

EPS = 1e-5          # torch.nn.LayerNorm default eps
NEG_SLOPE = 0.01    # LeakyReLU negative_slope


def _layernorm(z, w, b):
    # biased variance, matches torch.nn.LayerNorm — keep in f32
    mu = jnp.mean(z, axis=-1, keepdims=True)
    var = jnp.mean((z - mu) ** 2, axis=-1, keepdims=True)
    return (z - mu) * jax.lax.rsqrt(var + EPS) * w + b


# ---------------------------------------------------------------------------
# Pass 1: LayerNorm1 + fused QKV projection; K written pre-transposed once.
# ---------------------------------------------------------------------------
def qkv_kernel(x_ref,                 # (1, T, C) f32
               ln1w_ref, ln1b_ref,    # (1, C) f32
               wqkv_ref,              # (C, 3*Dh) bf16  [q*scale | k | v], head-major cols
               q_ref,                 # (1, H, T, hs) bf16
               kT_ref,                # (1, nKV, H, hs, tk) bf16   (K^T, kv-tile-major)
               v_ref):                # (1, nKV, H, tk, hs) bf16
    T, C = x_ref.shape[1], x_ref.shape[2]
    H, hs = q_ref.shape[1], q_ref.shape[3]
    nKV, tk = kT_ref.shape[1], kT_ref.shape[4]
    Dh = H * hs

    xn = _layernorm(x_ref[0], ln1w_ref[0], ln1b_ref[0])                    # (T, C) f32
    qkv = jnp.dot(xn.astype(jnp.bfloat16), wqkv_ref[...],
                  preferred_element_type=jnp.float32)                      # (T, 3Dh) f32

    def heads(a):                                                          # (T, Dh) -> (H, T, hs)
        return a.reshape(T, H, hs).transpose(1, 0, 2)

    q_ref[0] = heads(qkv[:, 0:Dh]).astype(jnp.bfloat16)                    # hs**-0.5 already folded

    # K: transpose ONCE here (never per query tile); kv-tile-major so the attention
    # kernel indexes kv tiles on a leading untiled axis (no dynamic lane slicing).
    k4 = heads(qkv[:, Dh:2 * Dh]).reshape(H, nKV, tk, hs).transpose(1, 0, 2, 3)  # (nKV,H,tk,hs)
    kT_ref[0] = jnp.swapaxes(k4, -1, -2).astype(jnp.bfloat16)                    # (nKV,H,hs,tk)

    v4 = heads(qkv[:, 2 * Dh:3 * Dh]).reshape(H, nKV, tk, hs).transpose(1, 0, 2, 3)
    v_ref[0] = v4.astype(jnp.bfloat16)                                           # (nKV,H,tk,hs)


# ---------------------------------------------------------------------------
# Pass 2: causal flash attention (online softmax over kv tiles) + proj + FFN.
# ---------------------------------------------------------------------------
def attn_ffn_kernel(x_ref,                  # (1, tq, C) f32  residual tile
                    q_ref,                  # (1, H, tq, hs) bf16 (score scale folded)
                    kT_ref,                 # (1, nKV, H, hs, tk) bf16
                    v_ref,                  # (1, nKV, H, tk, hs) bf16
                    wproj_ref, bproj_ref,   # (H, hs, C) bf16, (1, C) f32
                    ln2w_ref, ln2b_ref,     # (1, C) f32
                    w1_ref, b1_ref,         # (C, 4C) bf16, (1, 4C) f32
                    w2_ref, b2_ref,         # (4C, C) bf16, (1, C) f32
                    o_ref):                 # (1, tq, C)
    j = pl.program_id(1)                    # query-tile index
    H, hs, tk = kT_ref.shape[2], kT_ref.shape[3], kT_ref.shape[4]
    tq, C = o_ref.shape[1], o_ref.shape[2]

    q = q_ref[0]                                                           # (H, tq, hs) bf16

    # causal mask for the diagonal kv tile only (tk == tq -> mask is j-invariant)
    row = jax.lax.broadcasted_iota(jnp.int32, (tq, tk), 0)
    col = jax.lax.broadcasted_iota(jnp.int32, (tq, tk), 1)
    not_tril = col > row

    def kv_step(k_idx, carry):
        m, l, acc = carry
        kT_blk = kT_ref[0, k_idx]                                          # (H, hs, tk) bf16
        v_blk = v_ref[0, k_idx]                                            # (H, tk, hs) bf16
        s = jnp.einsum('hqd,hdk->hqk', q, kT_blk,
                       preferred_element_type=jnp.float32)                 # (H, tq, tk) f32
        # tiles strictly below the diagonal are fully visible; mask only when k_idx == j
        s = jnp.where(jnp.logical_and(k_idx == j, not_tril)[None], -jnp.inf, s)
        m_new = jnp.maximum(m, jnp.max(s, axis=-1, keepdims=True))
        alpha = jnp.exp(m - m_new)
        p = jnp.exp(s - m_new)
        l_new = alpha * l + jnp.sum(p, axis=-1, keepdims=True)
        acc_new = alpha * acc + jnp.einsum('hqk,hkd->hqd', p.astype(jnp.bfloat16),
                                           v_blk, preferred_element_type=jnp.float32)
        return m_new, l_new, acc_new

    m0 = jnp.full((H, tq, 1), -jnp.inf, jnp.float32)
    l0 = jnp.zeros((H, tq, 1), jnp.float32)
    a0 = jnp.zeros((H, tq, hs), jnp.float32)
    m, l, acc = jax.lax.fori_loop(0, j + 1, kv_step, (m0, l0, a0))         # causal: kv tiles 0..j

    att = (acc * pl.reciprocal(l, approx=True)).astype(jnp.bfloat16)       # (H, tq, hs)
    # (attention dropout / proj dropout / FFN dropout are identity in eval mode)

    # output projection: H accumulating MXU matmuls against per-head wproj slabs
    # (avoids the per-tile head-concat transpose; output stays lane-dense in C)
    sa = jnp.zeros((tq, C), jnp.float32)
    for h in range(H):                                                     # H is static
        sa = sa + jnp.dot(att[h], wproj_ref[h], preferred_element_type=jnp.float32)
    sa = sa + bproj_ref[0]

    x1 = x_ref[0] + sa                                                     # residual 1 (f32)

    xn2 = _layernorm(x1, ln2w_ref[0], ln2b_ref[0])
    hdn = jnp.dot(xn2.astype(jnp.bfloat16), w1_ref[...],
                  preferred_element_type=jnp.float32) + b1_ref[0]
    hdn = jnp.where(hdn >= 0, hdn, NEG_SLOPE * hdn)                        # LeakyReLU (f32)
    ff = jnp.dot(hdn.astype(jnp.bfloat16), w2_ref[...],
                 preferred_element_type=jnp.float32) + b2_ref[0]

    o_ref[0] = (x1 + ff).astype(o_ref.dtype)                               # residual 2


def _vmem_limit(nbytes_est):
    # 2x headroom over the static estimate, clamped to v7x's 64 MiB physical VMEM.
    return int(min(max(2 * nbytes_est, 8 << 20), 64 << 20))


def transformer_block(x, params, *, tq=None):
    B, T, C = x.shape
    H, _, hs = params['wq'].shape
    Dh = H * hs

    if tq is None:
        # default 128-row query tiles; re-derive downward if VMEM-tight (e.g. v7x)
        tq = T if T <= 128 else (128 if T % 128 == 0 else T)
    assert T % tq == 0, "tq must divide T"
    assert tq == T or tq % 16 == 0, "tq must be a multiple of 16 (bf16 sublane packing)"
    nQ = T // tq
    tk = tq                               # kv tile == query tile (diagonal mask is j-invariant)
    nKV = T // tk

    # ---- pack weights in the wrapper (lane-dense bf16 MXU operands) ----
    scale = hs ** -0.5
    wq_f = jnp.transpose(params['wq'], (1, 0, 2)).reshape(C, Dh) * scale   # fold score scale into Q
    wk_f = jnp.transpose(params['wk'], (1, 0, 2)).reshape(C, Dh)
    wv_f = jnp.transpose(params['wv'], (1, 0, 2)).reshape(C, Dh)
    wqkv = jnp.concatenate([wq_f, wk_f, wv_f], axis=1).astype(jnp.bfloat16)   # (C, 3Dh)
    wproj = params['wproj'].astype(jnp.bfloat16)                              # (H, hs, C) per-head
    w1 = params['w1'].astype(jnp.bfloat16)                                    # (C, 4C)
    w2 = params['w2'].astype(jnp.bfloat16)                                    # (4C, C)

    def vmem():
        # invariant weights/biases: whole-array VMEM residents (loaded once, not double-buffered)
        return pl.BlockSpec(memory_space=pltpu.MemorySpace.VMEM)

    # ------------------- pass 1: LN1 + fused QKV projection -------------------
    qkv_vmem = (C * 3 * Dh * 2 + 3 * C * 4                       # residents
                + 2 * (T * C * 4 + 3 * T * Dh * 2)               # double-buffered operands
                + T * C * 4 + 2 * T * 3 * Dh * 4)                # temporaries
    qkv_cost = pl.CostEstimate(
        flops=int(2 * B * T * C * 3 * Dh),
        transcendentals=int(B * T),
        bytes_accessed=int(B * T * C * 4 + C * 3 * Dh * 2 + 3 * B * T * Dh * 2))

    q, kT, v = pl.pallas_call(
        qkv_kernel,
        out_shape=(jax.ShapeDtypeStruct((B, H, T, hs), jnp.bfloat16),
                   jax.ShapeDtypeStruct((B, nKV, H, hs, tk), jnp.bfloat16),
                   jax.ShapeDtypeStruct((B, nKV, H, tk, hs), jnp.bfloat16)),
        grid=(B,),
        in_specs=[pl.BlockSpec((1, T, C), lambda b: (b, 0, 0)),
                  vmem(), vmem(), vmem()],
        out_specs=(pl.BlockSpec((1, H, T, hs), lambda b: (b, 0, 0, 0)),
                   pl.BlockSpec((1, nKV, H, hs, tk), lambda b: (b, 0, 0, 0, 0)),
                   pl.BlockSpec((1, nKV, H, tk, hs), lambda b: (b, 0, 0, 0, 0))),
        compiler_params=pltpu.CompilerParams(
            dimension_semantics=("parallel",),
            vmem_limit_bytes=_vmem_limit(qkv_vmem)),
        cost_estimate=qkv_cost,
    )(x, params['ln1w'], params['ln1b'], wqkv)

    # -------- pass 2: causal flash attention + output proj + FFN --------
    attn_vmem = ((Dh * C + 8 * C * C) * 2 + 9 * C * 4                             # residents
                 + 2 * (2 * tq * C * 4 + H * tq * hs * 2 + 2 * H * T * hs * 2)    # pipelined operands
                 + 3 * H * tq * tk * 4 + 3 * H * tq * hs * 4                      # score slab + carries
                 + 2 * tq * 4 * C * 4 + 4 * tq * C * 4)                           # FFN hidden + row temps
    attn_cost = pl.CostEstimate(
        flops=int(B * (2 * H * T * T * hs + 2 * T * Dh * C + 16 * T * C * C)),
        transcendentals=int(B * (H * T * T // 2 + H * T + 2 * T)),
        bytes_accessed=int(2 * B * T * C * 4 + 3 * B * T * Dh * 2
                           + (Dh * C + 8 * C * C) * 2 + 9 * C * 4))

    return pl.pallas_call(
        attn_ffn_kernel,
        out_shape=jax.ShapeDtypeStruct((B, T, C), x.dtype),
        grid=(B, nQ),
        in_specs=[
            pl.BlockSpec((1, tq, C), lambda b, j: (b, j, 0)),                 # x residual tile
            pl.BlockSpec((1, H, tq, hs), lambda b, j: (b, 0, j, 0)),          # q tile
            pl.BlockSpec((1, nKV, H, hs, tk), lambda b, j: (b, 0, 0, 0, 0)),  # K^T (whole seq / batch)
            pl.BlockSpec((1, nKV, H, tk, hs), lambda b, j: (b, 0, 0, 0, 0)),  # V   (whole seq / batch)
            vmem(), vmem(),                                                   # wproj, bproj
            vmem(), vmem(),                                                   # ln2 w/b
            vmem(), vmem(),                                                   # ffn w1, b1
            vmem(), vmem(),                                                   # ffn w2, b2
        ],
        out_specs=pl.BlockSpec((1, tq, C), lambda b, j: (b, j, 0)),
        compiler_params=pltpu.CompilerParams(
            dimension_semantics=("parallel", "parallel"),   # no cross-tile deps -> v7x megacore OK
            vmem_limit_bytes=_vmem_limit(attn_vmem)),
        cost_estimate=attn_cost,
    )(x, q, kT, v, wproj, params['bproj'], params['ln2w'], params['ln2b'],
      w1, params['b1'], w2, params['b2'])


def reference_block(x, p):
    """Pure-JAX (f32) mirror of the PyTorch forward (eval mode) for validation."""
    xn = _layernorm(x, p['ln1w'][0], p['ln1b'][0])
    q = jnp.einsum('btc,hcd->bhtd', xn, p['wq'])
    k = jnp.einsum('btc,hcd->bhtd', xn, p['wk'])
    v = jnp.einsum('btc,hcd->bhtd', xn, p['wv'])
    hs = q.shape[-1]
    wei = jnp.einsum('bhtd,bhsd->bhts', q, k) * (hs ** -0.5)
    T = x.shape[1]
    causal = jnp.tril(jnp.ones((T, T), bool))
    wei = jnp.where(causal[None, None], wei, -jnp.inf)
    wei = jax.nn.softmax(wei, axis=-1)
    att = jnp.einsum('bhts,bhsd->bhtd', wei, v)
    sa = jnp.einsum('bhtd,hdc->btc', att, p['wproj']) + p['bproj'][0]
    x1 = x + sa
    xn2 = _layernorm(x1, p['ln2w'][0], p['ln2b'][0])
    h = xn2 @ p['w1'] + p['b1'][0]
    h = jnp.where(h >= 0, h, NEG_SLOPE * h)
    return x1 + h @ p['w2'] + p['b2'][0]


def init_params(key, n_embd, n_head):
    hs = n_embd // n_head
    ks = jax.random.split(key, 8)
    s = 0.02
    return {
        'ln1w': jnp.ones((1, n_embd), jnp.float32),
        'ln1b': jnp.zeros((1, n_embd), jnp.float32),
        'wq': s * jax.random.normal(ks[0], (n_head, n_embd, hs), jnp.float32),
        'wk': s * jax.random.normal(ks[1], (n_head, n_embd, hs), jnp.float32),
        'wv': s * jax.random.normal(ks[2], (n_head, n_embd, hs), jnp.float32),
        'wproj': s * jax.random.normal(ks[3], (n_head, hs, n_embd), jnp.float32),
        'bproj': s * jax.random.normal(ks[4], (1, n_embd), jnp.float32),
        'ln2w': jnp.ones((1, n_embd), jnp.float32),
        'ln2b': jnp.zeros((1, n_embd), jnp.float32),
        'w1': s * jax.random.normal(ks[5], (n_embd, 4 * n_embd), jnp.float32),
        'b1': jnp.zeros((1, 4 * n_embd), jnp.float32),
        'w2': s * jax.random.normal(ks[6], (4 * n_embd, n_embd), jnp.float32),
        'b2': jnp.zeros((1, n_embd), jnp.float32),
    }


if __name__ == "__main__":
    # Small shapes consistent with the module: (B, T, C), C divisible by n_head.
    # T=32 with tq=16 exercises the multi-tile flash path (kv tiles 0..j) and the
    # diagonal-only causal mask across query-tile boundaries.
    B, T, n_embd, n_head = 2, 32, 64, 4
    key = jax.random.PRNGKey(0)
    kx, kp = jax.random.split(key)
    x = jax.random.normal(kx, (B, T, n_embd), jnp.float32)
    params = init_params(kp, n_embd, n_head)

    out = transformer_block(x, params, tq=16)
    out = jax.block_until_ready(out)

    ref = reference_block(x, params)
    assert out.shape == (B, T, n_embd)
    max_err = float(jnp.max(jnp.abs(out - ref)))
    # bf16 MXU operands + approx reciprocal in softmax -> loose tolerance
    assert jnp.allclose(out, ref, rtol=1e-2, atol=1e-2), f"mismatch vs reference (max abs err {max_err})"

    print("KERNEL_OK")
</pallas_src>

<mosaic_0001>
module attributes {stable_mosaic.version = 11 : i64} {
  func.func @qkv_kernel(%arg0: i32, %arg1: memref<1x32x64xf32, #tpu.memory_space<vmem>>, %arg2: memref<1x64xf32, #tpu.memory_space<vmem>>, %arg3: memref<1x64xf32, #tpu.memory_space<vmem>>, %arg4: memref<64x192xbf16, #tpu.memory_space<vmem>>, %arg5: memref<1x4x32x16xbf16, #tpu.memory_space<vmem>>, %arg6: memref<1x2x4x16x16xbf16, #tpu.memory_space<vmem>>, %arg7: memref<1x2x4x16x16xbf16, #tpu.memory_space<vmem>>) attributes {dimension_semantics = [#tpu.dimension_semantics<parallel>], iteration_bounds = array<i64: 2>, scalar_prefetch = 0 : i64, scratch_operands = 0 : i64, tpu.core_type = #tpu.core_type<tc>, window_params = [{transform_indices = @transform_0, window_bounds = array<i64: 1, 32, 64>}, {pipeline_mode = #tpu.pipeline_mode<synchronous>, transform_indices = @transform_1, window_bounds = array<i64: 1, 64>}, {pipeline_mode = #tpu.pipeline_mode<synchronous>, transform_indices = @transform_2, window_bounds = array<i64: 1, 64>}, {pipeline_mode = #tpu.pipeline_mode<synchronous>, transform_indices = @transform_3, window_bounds = array<i64: 64, 192>}, {transform_indices = @transform_4, window_bounds = array<i64: 1, 4, 32, 16>}, {transform_indices = @transform_5, window_bounds = array<i64: 1, 2, 4, 16, 16>}, {transform_indices = @transform_6, window_bounds = array<i64: 1, 2, 4, 16, 16>}]} {
    %c0 = arith.constant 0 : index
    %c0_0 = arith.constant 0 : index
    %c0_1 = arith.constant 0 : index
    %0 = vector.load %arg1[%c0, %c0_0, %c0_1] : memref<1x32x64xf32, #tpu.memory_space<vmem>>, vector<1x32x64xf32>
    %1 = vector.shape_cast %0 : vector<1x32x64xf32> to vector<32x64xf32>
    %c0_2 = arith.constant 0 : index
    %c0_3 = arith.constant 0 : index
    %2 = vector.load %arg2[%c0_2, %c0_3] : memref<1x64xf32, #tpu.memory_space<vmem>>, vector<1x64xf32>
    %3 = vector.shape_cast %2 : vector<1x64xf32> to vector<64xf32>
    %c0_4 = arith.constant 0 : index
    %c0_5 = arith.constant 0 : index
    %4 = vector.load %arg3[%c0_4, %c0_5] : memref<1x64xf32, #tpu.memory_space<vmem>>, vector<1x64xf32>
    %5 = vector.shape_cast %4 : vector<1x64xf32> to vector<64xf32>
    %cst = arith.constant dense<0.000000e+00> : vector<32xf32>
    %6 = vector.multi_reduction <add>, %1, %cst [1] : vector<32x64xf32> to vector<32xf32>
    %7 = vector.shape_cast %6 : vector<32xf32> to vector<32x1xf32>
    %cst_6 = arith.constant 6.400000e+01 : f32
    %8 = vector.broadcast %cst_6 : f32 to vector<32x1xf32>
    %9 = arith.divf %7, %8 : vector<32x1xf32>
    %10 = vector.broadcast %9 : vector<32x1xf32> to vector<32x64xf32>
    %11 = arith.subf %1, %10 : vector<32x64xf32>
    %12 = arith.mulf %11, %11 : vector<32x64xf32>
    %cst_7 = arith.constant dense<0.000000e+00> : vector<32xf32>
    %13 = vector.multi_reduction <add>, %12, %cst_7 [1] : vector<32x64xf32> to vector<32xf32>
    %14 = vector.shape_cast %13 : vector<32xf32> to vector<32x1xf32>
    %cst_8 = arith.constant 6.400000e+01 : f32
    %15 = vector.broadcast %cst_8 : f32 to vector<32x1xf32>
    %16 = arith.divf %14, %15 : vector<32x1xf32>
    %17 = vector.broadcast %9 : vector<32x1xf32> to vector<32x64xf32>
    %18 = arith.subf %1, %17 : vector<32x64xf32>
    %cst_9 = arith.constant 9.99999974E-6 : f32
    %19 = vector.broadcast %cst_9 : f32 to vector<32x1xf32>
    %20 = arith.addf %16, %19 : vector<32x1xf32>
    %21 = math.rsqrt %20 : vector<32x1xf32>
    %22 = vector.broadcast %21 : vector<32x1xf32> to vector<32x64xf32>
    %23 = arith.mulf %18, %22 : vector<32x64xf32>
    %24 = vector.shape_cast %3 : vector<64xf32> to vector<1x64xf32>
    %25 = vector.broadcast %24 : vector<1x64xf32> to vector<32x64xf32>
    %26 = arith.mulf %23, %25 : vector<32x64xf32>
    %27 = vector.shape_cast %5 : vector<64xf32> to vector<1x64xf32>
    %28 = vector.broadcast %27 : vector<1x64xf32> to vector<32x64xf32>
    %29 = arith.addf %26, %28 : vector<32x64xf32>
    %30 = arith.truncf %29 : vector<32x64xf32> to vector<32x64xbf16>
    %c0_10 = arith.constant 0 : index
    %c0_11 = arith.constant 0 : index
    %31 = vector.load %arg4[%c0_10, %c0_11] : memref<64x192xbf16, #tpu.memory_space<vmem>>, vector<64x192xbf16>
    %cst_12 = arith.constant dense<0.000000e+00> : vector<32x192xf32>
    %32 = tpu.matmul %30, %31, %cst_12 {dimension_numbers = #tpu.dot_dimension_numbers<[1], [0], [0], [1], [0, 0, 1, 1], [], []>} : vector<32x64xbf16>, vector<64x192xbf16>, vector<32x192xf32> -> vector<32x192xf32>
    %33 = vector.extract_strided_slice %32 {offsets = [0, 0], sizes = [32, 64], strides = [1, 1]} : vector<32x192xf32> to vector<32x64xf32>
    %34 = vector.shape_cast %33 : vector<32x64xf32> to vector<32x4x16xf32>
    %35 = tpu.transpose %34, [1, 0, 2] : vector<32x4x16xf32> -> vector<4x32x16xf32>
    %36 = arith.truncf %35 : vector<4x32x16xf32> to vector<4x32x16xbf16>
    %c0_13 = arith.constant 0 : index
    %c0_14 = arith.constant 0 : index
    %c0_15 = arith.constant 0 : index
    %c0_16 = arith.constant 0 : index
    %37 = vector.load %arg5[%c0_13, %c0_14, %c0_15, %c0_16] : memref<1x4x32x16xbf16, #tpu.memory_space<vmem>>, vector<1x4x32x16xbf16>
    %38 = vector.shape_cast %37 : vector<1x4x32x16xbf16> to vector<4x32x16xbf16>
    %39 = vector.shape_cast %36 : vector<4x32x16xbf16> to vector<1x4x32x16xbf16>
    tpu.vector_store %arg5[%c0_13, %c0_14, %c0_15, %c0_16], %39 {strides = array<i32>} : memref<1x4x32x16xbf16, #tpu.memory_space<vmem>>, vector<1x4x32x16xbf16>,
    %40 = vector.extract_strided_slice %32 {offsets = [0, 64], sizes = [32, 64], strides = [1, 1]} : vector<32x192xf32> to vector<32x64xf32>
    %41 = vector.shape_cast %40 : vector<32x64xf32> to vector<32x4x16xf32>
    %42 = tpu.transpose %41, [1, 0, 2] : vector<32x4x16xf32> -> vector<4x32x16xf32>
    %43 = vector.shape_cast %42 : vector<4x32x16xf32> to vector<4x2x16x16xf32>
    %44 = tpu.transpose %43, [1, 0, 2, 3] : vector<4x2x16x16xf32> -> vector<2x4x16x16xf32>
    %45 = tpu.transpose %44, [0, 1, 3, 2] : vector<2x4x16x16xf32> -> vector<2x4x16x16xf32>
    %46 = arith.truncf %45 : vector<2x4x16x16xf32> to vector<2x4x16x16xbf16>
    %c0_17 = arith.constant 0 : index
    %c0_18 = arith.constant 0 : index
    %c0_19 = arith.constant 0 : index
    %c0_20 = arith.constant 0 : index
    %c0_21 = arith.constant 0 : index
    %47 = vector.load %arg6[%c0_17, %c0_18, %c0_19, %c0_20, %c0_21] : memref<1x2x4x16x16xbf16, #tpu.memory_space<vmem>>, vector<1x2x4x16x16xbf16>
    %48 = vector.shape_cast %47 : vector<1x2x4x16x16xbf16> to vector<2x4x16x16xbf16>
    %49 = vector.shape_cast %46 : vector<2x4x16x16xbf16> to vector<1x2x4x16x16xbf16>
    tpu.vector_store %arg6[%c0_17, %c0_18, %c0_19, %c0_20, %c0_21], %49 {strides = array<i32>} : memref<1x2x4x16x16xbf16, #tpu.memory_space<vmem>>, vector<1x2x4x16x16xbf16>,
    %50 = vector.extract_strided_slice %32 {offsets = [0, 128], sizes = [32, 64], strides = [1, 1]} : vector<32x192xf32> to vector<32x64xf32>
    %51 = vector.shape_cast %50 : vector<32x64xf32> to vector<32x4x16xf32>
    %52 = tpu.transpose %51, [1, 0, 2] : vector<32x4x16xf32> -> vector<4x32x16xf32>
    %53 = vector.shape_cast %52 : vector<4x32x16xf32> to vector<4x2x16x16xf32>
    %54 = tpu.transpose %53, [1, 0, 2, 3] : vector<4x2x16x16xf32> -> vector<2x4x16x16xf32>
    %55 = arith.truncf %54 : vector<2x4x16x16xf32> to vector<2x4x16x16xbf16>
    %c0_22 = arith.constant 0 : index
    %c0_23 = arith.constant 0 : index
    %c0_24 = arith.constant 0 : index
    %c0_25 = arith.constant 0 : index
    %c0_26 = arith.constant 0 : index
    %56 = vector.load %arg7[%c0_22, %c0_23, %c0_24, %c0_25, %c0_26] : memref<1x2x4x16x16xbf16, #tpu.memory_space<vmem>>, vector<1x2x4x16x16xbf16>
    %57 = vector.shape_cast %56 : vector<1x2x4x16x16xbf16> to vector<2x4x16x16xbf16>
    %58 = vector.shape_cast %55 : vector<2x4x16x16xbf16> to vector<1x2x4x16x16xbf16>
    tpu.vector_store %arg7[%c0_22, %c0_23, %c0_24, %c0_25, %c0_26], %58 {strides = array<i32>} : memref<1x2x4x16x16xbf16, #tpu.memory_space<vmem>>, vector<1x2x4x16x16xbf16>,
    return
  }
  func.func @transform_0(%arg0: i32) -> (i32, i32, i32) {
    %c0_i32 = arith.constant 0 : i32
    %c0_i32_0 = arith.constant 0 : i32
    %c0_i32_1 = arith.constant 0 : i32
    return %arg0, %c0_i32, %c0_i32_0 : i32, i32, i32
  }
  func.func @transform_1(%arg0: i32) -> (i32, i32) {
    %c0_i32 = arith.constant 0 : i32
    %c0_i32_0 = arith.constant 0 : i32
    %c0_i32_1 = arith.constant 0 : i32
    return %c0_i32, %c0_i32_0 : i32, i32
  }
  func.func @transform_2(%arg0: i32) -> (i32, i32) {
    %c0_i32 = arith.constant 0 : i32
    %c0_i32_0 = arith.constant 0 : i32
    %c0_i32_1 = arith.constant 0 : i32
    return %c0_i32, %c0_i32_0 : i32, i32
  }
  func.func @transform_3(%arg0: i32) -> (i32, i32) {
    %c0_i32 = arith.constant 0 : i32
    %c0_i32_0 = arith.constant 0 : i32
    %c0_i32_1 = arith.constant 0 : i32
    return %c0_i32, %c0_i32_0 : i32, i32
  }
  func.func @transform_4(%arg0: i32) -> (i32, i32, i32, i32) {
    %c0_i32 = arith.constant 0 : i32
    %c0_i32_0 = arith.constant 0 : i32
    %c0_i32_1 = arith.constant 0 : i32
    %c0_i32_2 = arith.constant 0 : i32
    return %arg0, %c0_i32, %c0_i32_0, %c0_i32_1 : i32, i32, i32, i32
  }
  func.func @transform_5(%arg0: i32) -> (i32, i32, i32, i32, i32) {
    %c0_i32 = arith.constant 0 : i32
    %c0_i32_0 = arith.constant 0 : i32
    %c0_i32_1 = arith.constant 0 : i32
    %c0_i32_2 = arith.constant 0 : i32
    %c0_i32_3 = arith.constant 0 : i32
    return %arg0, %c0_i32, %c0_i32_0, %c0_i32_1, %c0_i32_2 : i32, i32, i32, i32, i32
  }
  func.func @transform_6(%arg0: i32) -> (i32, i32, i32, i32, i32) {
    %c0_i32 = arith.constant 0 : i32
    %c0_i32_0 = arith.constant 0 : i32
    %c0_i32_1 = arith.constant 0 : i32
    %c0_i32_2 = arith.constant 0 : i32
    %c0_i32_3 = arith.constant 0 : i32
    return %arg0, %c0_i32, %c0_i32_0, %c0_i32_1, %c0_i32_2 : i32, i32, i32, i32, i32
  }
}

</mosaic_0001>

<bundles_post_ra>
// kernel: tpu_custom_call.1
= control target key start
LH: loop header
LB: loop body
LE: loop exit
PB: predicated region body
PF: predicated region fallthrough
CT: control target
= control target key end

     0   :  { %12 = vsyncpa [#allocation3], 0  ;;  %s4221_s0 = inlined_call_operand.hbm [shape: f32[2,32,64], index: 0, kind: input, shape index: {}]   ;;  %s4222_s1 = inlined_call_operand.vmem [shape: f32[1,64], index: 1, kind: input, shape index: {}]   ;;  %s4223_s2 = inlined_call_operand.vmem [shape: f32[1,64], index: 2, kind: input, shape index: {}]   ;;  %s4224_s3 = inlined_call_operand.hbm [shape: bf16[64,192], index: 3, kind: input, shape index: {}]   ;;  %s4225_s4 = inlined_call_operand.vmem [shape: bf16[2,4,32,16], index: 4, kind: output, shape index: {0}]   ;;  %s4226_s5 = inlined_call_operand.hbm [shape: bf16[2,2,4,16,16], index: 5, kind: output, shape index: {1}]   ;;  %s4227_s6 = inlined_call_operand.hbm [shape: bf16[2,2,4,16,16], index: 6, kind: output, shape index: {2}]  }
   0x1   :  { %14 = vsyncpa [#allocation3 + $0x1], 0 }
   0x2   :  { %15 = vsyncpa [#allocation6], 0 }
   0x3   :  { %16 = vsyncpa [#allocation4], 0 }
   0x4   :  { %18 = vsyncpa [#allocation4 + $0x1], 0 }
   0x5   :  { %19 = vsyncpa [#allocation9], 0 }
   0x6   :  { %21 = vsyncpa [#allocation9 + $0x1], 0  ;;  %s3464_s21 = smov 0   ;;  %s3466_s22 = smov 0  }
   0x7   :  { %s3468_s23 = smov 0   ;;  %s3470_s24 = smov 0  }
   0x8 LB: > { %s3485_s25 = sadd.s32 4294967295, %s3413_s24   ;;  %s2938_s26 = sadd.s32 4294967294, %s3413_s24   ;;  %s3413_s24 = sphi %s3470_s24, %s4247_s24   ;;  %s3409_s23 = sphi %s3468_s23, %s4246_s23   ;;  %s3405_s22 = sphi %s3466_s22, %s4245_s22   ;;  %s3401_s21 = sphi %s3464_s21, %s4244_s21  }
   0x9   : > { %p47_p0 = scmp.ne.s32.totalorder %s3405_s22, %s3401_s21  ;;  %p4228_p1 = scmp.eq.s32.totalorder %s3485_s25, 0 }
   0xa   : > { %p166_p3 = scmp.eq.s32.totalorder %s2938_s26, 1  ;;  %p2939_p5 = scmp.ge.s32.totalorder %s3413_s24, 1 }
   0xb   : > { %p3494_p4 = por %p4228_p1, %p47_p0  ;;  %p199_p7 = scmp.lt.s32.totalorder %s3413_s24, 3 }
   0xc   : > { %p3499_p6 = por %p166_p3, %p47_p0  ;;  %s3415_s30 = smov [#allocation5]  }
   0xd   : > { %s4231_s27 = scalar_select %p3494_p4, 1, 0 }
   0xe   : > { %s4232_s28 = scalar_select %p3499_p6, 1, 0 }
   0xf   : > { %p3504_p8 = pnand %p2939_p5, %p199_p7  ;;  %s217_s7 = sshll.u32 %s3415_s30, 4  ;;  %s3508_s7 = int_to_ptr.vmem [resolvable:$true] %s217_s7 }
  0x10   : > { %s3520_s9 = sadd.s32 1, %s3413_s24   ;;  %s34_s10 = sadd.s32 1, %s3409_s23 }
  0x11   : > { %s4233_s29 = scalar_select %p3504_p8, 1, 0 }
  0x12   : > { %p3114_p9 = pneg %p3504_p8  ;;  %s31_s11 = ssub.s32 %s3413_s24, %s3520_s9 }
  0x13   : > { %s3253_s14 = scalar_lea.hbm %s4224_s3, 1024 }
  0x14   : > { %p3515_p11 = pnand %p3114_p9, %p4228_p1  ;;  %p3254_p12 = scmp.ne.s32.totalorder %s4224_s3, %s3253_s14 }
  0x15   : > { %p3260_p5 = scmp.lt.u32.totalorder %s3253_s14, %s4224_s3 }
  0x16   : > { %p3255_p13 = pneg %p3515_p11 }
  0x18   : > { %p3256_p0 = pnand %p3255_p13, %p3254_p12 }
  0x1a   : > { %p3257_p3 = pneg %p3256_p0 }
  0x1c   : > { %p3262_p7 = pnand %p3260_p5, %p3257_p3 }
  0x1e   : > { %3265 = shalt.err (!%p3262_p7)
}
  0x1f   : > { %s3266_s19 = scalar_lea.vmem %s3508_s7, 1024  ;;  %p3274_p2 = scmp.lt.s32.totalorder %s3508_s7, %s3508_s7 }
  0x20   : > { %p3267_p9 = scmp.ne.s32.totalorder %s3508_s7, %s3266_s19  ;;  %p3275_p6 = scmp.lt.s32.totalorder %s3266_s19, %s3266_s19 }
  0x22   : > { %p3269_p10 = pnand %p3267_p9, %p3255_p13  ;;  %p3276_p4 = por %p3275_p6, %p3274_p2 }
  0x24   : > { %p3270_p1 = pneg %p3269_p10 }
  0x26   : > { %p3277_p8 = pnand %p3276_p4, %p3270_p1 }
  0x28   : > { %3280 = shalt.err (!%p3277_p8)
}
  0x29   : > { %s3416_s20 = smov 128   ;;  %s3417_s26 = smov 8  }
  0x2a   : > { %3117 = dma.hbm_to_vmem [thread:$0]  (!%p3515_p11), %s4224_s3, 1024, %s3508_s7, [#allocation6], %s3416_s20, %s3416_s20, %s3417_s26  }
  0x2b   : > { %p32_p1 = scmp.eq.s32.totalorder %s31_s11, 0  ;;  %p41_p2 = scmp.ne.s32.totalorder %s3409_s23, %s3405_s22 }
  0x2c   : > { %p42_p4 = scmp.eq.s32.totalorder %s3413_s24, 0  ;;  %p3130_p6 = scmp.lt.s32.totalorder %s3413_s24, 2 }
  0x2d   : > { %s3554_s13 = scalar_select %p32_p1, %s3409_s23, %s34_s10  }
  0x2e   : > { %p43_p8 = por %p42_p4, %p41_p2  ;;  %p4235_p10 = scmp.eq.s32.totalorder %s3485_s25, 1 }
  0x2f   : > { %s231_s8 = sand.u32 1, %s3409_s23   ;;  %s3044_s15 = sshll.u32 %s3413_s24, 9 }
  0x30   : > { %p3558_p12 = por %p4235_p10, %p41_p2  ;;  %s2942_s16 = sshll.u32 %s231_s8, 5 }
  0x31   : > { %s3567_s19 = scalar_lea.hbm %s4221_s0, %s3044_s15  ;;  %s235_s7 = scalar_lea.vmem [#allocation2], %s2942_s16 }
  0x32   : > { %s242_s10 = sshll.u32 %s235_s7, 4  ;;  %p3569_p11 = pnand %p3130_p6, %p43_p8  ;;  %s3573_s10 = int_to_ptr.vmem [resolvable:$true] %s242_s10 }
  0x33   : > { %s3575_s30 = scalar_lea.sflag [#allocation3], %s231_s8  ;;  %s3281_s12 = scalar_lea.hbm %s3567_s19, 512 }
  0x34   : > { %p3282_p13 = scmp.ne.s32.totalorder %s3567_s19, %s3281_s12  ;;  %p3283_p0 = pneg %p3569_p11 }
  0x35   : > { %s3286_s17 = scalar_lea.hbm %s4221_s0, 1024  ;;  %p3287_p7 = scmp.lt.u32.totalorder %s3567_s19, %s4221_s0 }
  0x36   : > { %p3284_p3 = pnand %p3283_p0, %p3282_p13  ;;  %p3288_p9 = scmp.lt.u32.totalorder %s3286_s17, %s3281_s12 }
  0x37   : > { %p3290_p2 = scmp.lt.u32.totalorder %s3281_s12, %s3567_s19 }
  0x38   : > { %p3285_p5 = pneg %p3284_p3  ;;  %p3289_p1 = por %p3288_p9, %p3287_p7 }
  0x3a   : > { %p3291_p4 = por %p3290_p2, %p3289_p1 }
  0x3c   : > { %p3292_p6 = pnand %p3291_p4, %p3285_p5 }
  0x3e   : > { %3295 = shalt.err (!%p3292_p6)
}
  0x3f   : > { %s3296_s8 = scalar_lea.vmem %s3573_s10, 512  ;;  %s3418_s15 = smov [#allocation2]  }
  0x40   : > { %p3297_p8 = scmp.ne.s32.totalorder %s3573_s10, %s3296_s8  ;;  %s3301_s16 = sshll.u32 %s3418_s15, 4  ;;  %s3302_s16 = int_to_ptr.vmem [resolvable:$false] %s3301_s16 }
  0x41   : > { %s3303_s18 = scalar_lea.vmem %s3302_s16, 1024  ;;  %p3304_p3 = scmp.lt.s32.totalorder %s3573_s10, %s3302_s16 }
  0x42   : > { %p3299_p10 = pnand %p3297_p8, %p3283_p0  ;;  %p3305_p7 = scmp.lt.s32.totalorder %s3303_s18, %s3296_s8 }
  0x44   : > { %p3300_p13 = pneg %p3299_p10  ;;  %p3306_p9 = por %p3305_p7, %p3304_p3 }
  0x46   : > { %p3307_p1 = pnand %p3306_p9, %p3300_p13 }
  0x48   : > { %3310 = shalt.err (!%p3307_p1)
}
  0x49   : > { %3121 = dma.hbm_to_vmem [thread:$0]  (!%p3569_p11), %s3567_s19, 512, %s3573_s10, %s3575_s30, %s3416_s20, %s3416_s20, %s3417_s26  }
  0x4a   : > { %p4238_p0 = scmp.ne.s32.totalorder %s4233_s29, 0 }
  0x4b   : > { %s3609_s12 = sand.u32 (!%p4238_p0), 1, %s3405_s22   ;;  %p4239_p5 = scmp.ne.s32.totalorder (!%p4238_p0), %s4231_s27, 0 }
  0x4c   : > { %254 = sbr.rel (%p4238_p0) target bundleno = 1084 (0x43c), region = 36  ;;  %s2946_s17 = sshll.u32 (!%p4238_p0), %s3609_s12, 5 }
  0x4d   : > { %s257_s7 = scalar_lea.sflag (!%p4238_p0), [#allocation3], %s3609_s12  ;;  %s260_s8 = scalar_lea.vmem (!%p4238_p0), [#allocation2], %s2946_s17 }
  0x53   : > { %3384 = dma.done.wait (%p4239_p5), %s257_s7, 512  }
  0x54   : > { %3386 = vsyncadd (%p4239_p5), %s257_s7, 4294966784  ;;  %p4240_p2 = scmp.eq.s32.totalorder %s3485_s25, 0 }
  0x56   : > { %3388 = dma.done.wait (%p4240_p2), [#allocation6], 1024   ;;  %p4241_p11 = pmov %p4240_p2 }
  0x57   : > { %vm315_vm0 = vcmask 523264   ;;  %v309_v0 = vld [vmem:[%s260_s8] sm:$0xff]  ;;  %v311_v1 = vld [vmem:[%s260_s8 + $0x10] sm:$0xff]  ;;  %v310_v2 = vld [vmem:[%s260_s8 + $0x8] sm:$0xff]  ;;  %v3419_v36 = vmov 0   ;;  %s3420_s19 = smov 112  }
  0x58   : > { %3390 = vsyncadd (%p4241_p11), [#allocation6], 4294966272  ;;  %v316_v3 = vsel %vm315_vm0, %v309_v0, 0.0  ;;  %v322_v4 = vsel %vm315_vm0, %v311_v1, 0.0  ;;  %v312_v5 = vld [vmem:[%s260_s8 + $0x18] sm:$0xff]  ;;  %v319_v6 = vsel %vm315_vm0, %v310_v2, 0.0  ;;  %477 = vmatprep.mubr.bf16.mxu0 %v3419_v36  ;;  %487 = vmatprep.mubr.bf16.mxu1 %v3419_v36 }
  0x59   : > { %317 = vadd.xlane.f32.xlu0 %v316_v3  ;;  %323 = vadd.xlane.f32.xlu1 %v322_v4  ;;  %v325_v7 = vsel %vm315_vm0, %v312_v5, 0.0  ;;  %v3233_v28 = vld [vmem:[#allocation5 + $0x4] ss:$8 sps:$4 sm:$0xff]   ;;  %v3235_v29 = vld [vmem:[#allocation5] ss:$8 sps:$4 sm:$0xff]   ;;  %s3421_s10 = smov 80  }
  0x5a   : > { %445 = vmatprep.subr.bf16.mxu0 %v3233_v28  ;;  %3096 = vmatprep.subr.bf16.mxu1 %v3233_v28  ;;  %v3236_v30 = vld [vmem:[#allocation5 + $0x14] ss:$8 sps:$4 sm:$0xff]   ;;  %v3238_v31 = vld [vmem:[#allocation5 + $0x10] ss:$8 sps:$4 sm:$0xff]   ;;  %v3239_v32 = vld [vmem:[#allocation5 + $0x24] ss:$8 sps:$4 sm:$0xff]  }
  0x5b   : > { %446 = vmatpush1.bf16.msra.mxu0 %v3235_v29  ;;  %3100 = vmatpush1.bf16.msra.mxu1 %v3235_v29  ;;  %v3241_v33 = vld [vmem:[#allocation5 + $0x20] ss:$8 sps:$4 sm:$0xff]   ;;  %v3242_v34 = vld [vmem:[#allocation5 + $0x34] ss:$8 sps:$4 sm:$0xff]   ;;  %v3244_v35 = vld [vmem:[#allocation5 + $0x30] ss:$8 sps:$4 sm:$0xff]  }
  0x5c   : > { %447 = vmatprep.subr.bf16.mxu0 %v3236_v30  ;;  %3097 = vmatprep.subr.bf16.mxu1 %v3236_v30  ;;  %v2952_v51 = vld [vmem:[%s4222_s1] ss:$0 sm:$0xff]  ;;  %s3422_s11 = smov 96   ;;  %s3423_s30 = smov 64   ;;  %vm1146_vm1 = vcmask 125952  }
  0x5d   : > { %320 = vadd.xlane.f32.xlu0 %v319_v6  ;;  %326 = vadd.xlane.f32.xlu1 %v325_v7  ;;  %v2953_v57 = vld [vmem:[%s4223_s2] ss:$0 sm:$0xff]  ;;  %p303_p4 = scmp.lt.s32.totalorder %s3485_s25, 1  ;;  %s2948_s8 = sshll.u32 %s3609_s12, 6 }
  0x5e   : > { %s3981_s27 = scalar_lea.vmem [#allocation8], %s2948_s8  ;;  %s3094_s29 = sshll.u32 %s3485_s25, 10 }
  0x5f   : > { %448 = vmatpush1.bf16.msra.mxu0 %v3238_v31  ;;  %3101 = vmatpush1.bf16.msra.mxu1 %v3238_v31  ;;  %s3729_s15 = scalar_select %p303_p4, %s3485_s25, 1 }
  0x60   : > { %449 = vmatprep.subr.bf16.mxu0 %v3239_v32  ;;  %3098 = vmatprep.subr.bf16.mxu1 %v3239_v32  ;;  %s2798_s20 = sshll.u32 %s3981_s27, 4  ;;  %s4093_s20 = int_to_ptr.vmem [resolvable:$true] %s2798_s20 }
  0x61   : > { %s3045_s16 = sshll.u32 %s3729_s15, 6  ;;  %s3311_s15 = scalar_lea.vmem %s4093_s20, 1024 }
  0x62   : > { %s3760_s7 = scalar_lea.vmem %s4225_s4, %s3045_s16  ;;  %p3312_p6 = scmp.ne.s32.totalorder %s4093_s20, %s3311_s15 }
  0x63   : > { %450 = vmatpush1.bf16.msra.mxu0 %v3241_v33  ;;  %3102 = vmatpush1.bf16.msra.mxu1 %v3241_v33  ;;  %s3426_s16 = smov [#allocation8]  }
  0x64   : > { %451 = vmatprep.subr.bf16.mxu0 %v3242_v34  ;;  %3099 = vmatprep.subr.bf16.mxu1 %v3242_v34  ;;  %p3313_p8 = pnand %p3312_p6, %p3558_p12  ;;  %s3315_s18 = sshll.u32 %s3426_s16, 4  ;;  %s3316_s18 = int_to_ptr.vmem [resolvable:$false] %s3315_s18 }
  0x65   : > { %s3317_s17 = scalar_lea.vmem %s3316_s18, 2048  ;;  %p3318_p13 = scmp.lt.s32.totalorder %s4093_s20, %s3316_s18 }
  0x66   : > { %p3314_p10 = pneg %p3313_p8  ;;  %p3319_p3 = scmp.lt.s32.totalorder %s3317_s17, %s3311_s15 }
  0x67   : > { %452 = vmatpush1.bf16.msra.mxu0 %v3244_v35  ;;  %3103 = vmatpush1.bf16.msra.mxu1 %v3244_v35 }
  0x68   : > { %p3320_p7 = por %p3319_p3, %p3318_p13 }
  0x6a   : > { %p3321_p9 = pnand %p3320_p7, %p3314_p10 }
  0xe6   : > { %v318_v8 = vpop.xlane.xlu0 %317  ;;  %v324_v9 = vpop.xlane.xlu1 %323 }
  0xe7   : > { %v329_v10 = vmul.f32 0.015625, %v318_v8  ;;  %v331_v11 = vmul.f32 0.015625, %v324_v9 }
  0xe9   : > { %v3625_v12 = vsub.f32 %v309_v0, %v329_v10  ;;  %v3627_v13 = vsub.f32 %v311_v1, %v331_v11 }
  0xea   : > { %v321_v14 = vpop.xlane.xlu0 %320  ;;  %v327_v15 = vpop.xlane.xlu1 %326 }
  0xeb   : > { %v330_v16 = vmul.f32 0.015625, %v321_v14  ;;  %v332_v17 = vmul.f32 0.015625, %v327_v15  ;;  %v337_v18 = vmul.f32 %v3625_v12, %v3625_v12  ;;  %v339_v19 = vmul.f32 %v3627_v13, %v3627_v13 }
  0xec   : > { %v543_v15 = vlaneseq }
  0xed   : > { %v334_v20 = vsub.f32 %v310_v2, %v330_v16  ;;  %v3633_v21 = vsub.f32 %v312_v5, %v332_v17  ;;  %v341_v22 = vsel %vm315_vm0, %v337_v18, 0.0  ;;  %v347_v23 = vsel %vm315_vm0, %v339_v19, 0.0 }
  0xee   : > { %342 = vadd.xlane.f32.xlu0 %v341_v22  ;;  %v3425_v17 = vmov 1934713408  }
  0xef   : > { %v338_v24 = vmul.f32 %v334_v20, %v334_v20  ;;  %v340_v25 = vmul.f32 %v3633_v21, %v3633_v21  ;;  %v573_v18 = vunpack.c.l.s4 %v3425_v17 }
  0xf1   : > { %v344_v26 = vsel %vm315_vm0, %v338_v24, 0.0  ;;  %v350_v27 = vsel %vm315_vm0, %v340_v25, 0.0 }
  0xf2   : > { %348 = vadd.xlane.f32.xlu0 %v347_v23  ;;  %345 = vadd.xlane.f32.xlu1 %v344_v26  ;;  %v574_v23 = vunpack.c.0.s8 %v573_v18 }
  0xf6   : > { %351 = vadd.xlane.f32.xlu1 %v350_v27 }
 0x17b   : > { %v343_v37 = vpop.xlane.xlu0 %342 }
 0x17c   : > { %v353_v38 = vmul.f32 0.015625, %v343_v37 }
 0x17e   : > { %v357_v39 = vadd.f32 1e-05, %v353_v38 }
 0x17f   : > { %v346_v40 = vpop.xlane.xlu1 %345  ;;  %v349_v41 = vpop.xlane.xlu0 %348 }
 0x180   : > { %3245 = vrsqrt.f32 %v357_v39  ;;  %v354_v42 = vmul.f32 0.015625, %v346_v40  ;;  %v355_v43 = vmul.f32 0.015625, %v349_v41 }
 0x182   : > { %v358_v44 = vadd.f32 1e-05, %v354_v42  ;;  %v359_v45 = vadd.f32 1e-05, %v355_v43 }
 0x183   : > { %v352_v46 = vpop.xlane.xlu1 %351 }
 0x184   : > { %3247 = vrsqrt.f32 %v358_v44  ;;  %v356_v47 = vmul.f32 0.015625, %v352_v46 }
 0x185   : > { %3249 = vrsqrt.f32 %v359_v45 }
 0x186   : > { %v360_v48 = vadd.f32 1e-05, %v356_v47 }
 0x188   : > { %3251 = vrsqrt.f32 %v360_v48 }
 0x18a   : > { %v3246_v49 = vpop.eup %3245 }
 0x18b   : > { %v365_v50 = vmul.f32 %v3246_v49, %v3625_v12 }
 0x18d   : > { %v375_v55 = vmul.f32 %v2952_v51, %v365_v50 }
 0x18e   : > { %v3248_v52 = vpop.eup %3247 }
 0x18f   : > { %v3250_v53 = vpop.eup %3249  ;;  %v366_v54 = vmul.f32 %v3248_v52, %v334_v20  ;;  %v385_v61 = vadd.f32 %v2953_v57, %v375_v55  ;;  %v544_v20 = vshrl.u32 %v543_v15, 7 }
 0x190   : > { %v367_v56 = vmul.f32 %v3250_v53, %v3627_v13  ;;  %v3424_v13 = vmov 1983009808  }
 0x191   : > { %v376_v58 = vmul.f32 %v2952_v51, %v366_v54  ;;  %v541_v14 = vunpack.c.l.s4 %v3424_v13  ;;  %v3699_v31 = vsub.s32 %v574_v23, %v544_v20 }
 0x192   : > { %v3252_v59 = vpop.eup %3251  ;;  %v377_v63 = vmul.f32 %v2952_v51, %v367_v56 }
 0x193   : > { %v368_v60 = vmul.f32 %v3252_v59, %v3633_v21  ;;  %v386_v62 = vadd.f32 %v2953_v57, %v376_v58  ;;  %v542_v19 = vunpack.c.0.s8 %v541_v14 }
 0x194   : > { %v387_v2 = vadd.f32 %v2953_v57, %v377_v63 }
 0x195   : > { %v389_v0 = vpack.c.bf16 %v386_v62, %v385_v61  ;;  %v378_v1 = vmul.f32 %v2952_v51, %v368_v60  ;;  %v3696_v24 = vsub.s32 %v542_v19, %v544_v20 }
 0x197   : > { %2962 = vmatmul.mubr.msk.bf16.vlgmr.msra.gmra.mrb[0].mxu0 %vm315_vm0, %v389_v0  ;;  %v388_v3 = vadd.f32 %v2953_v57, %v378_v1 }
 0x199   : > { %v390_v4 = vpack.c.bf16 %v388_v3, %v387_v2 }
 0x19b   : > { %2963 = vmatmul.mubr.msk.bf16.vlgmr.msra.gmra.mrb[0].mxu1 %vm315_vm0, %v390_v4 }
 0x26a   : > { %v479_v5 = vpop.f32.mrb[0].mxu0 }
 0x26b   : > { %502 = vrot.lane.b32.xlu0 %v479_v5, %s3420_s19  ;;  %v3653_v6 = vpop.f32.mrb[1].mxu0 }
 0x26c   : > { %v3655_v7 = vpop.f32.mrb[2].mxu0 }
 0x26d   : > { %v3657_v8 = vpop.f32.mrb[3].mxu0 }
 0x26e   : > { %v3659_v9 = vpop.f32.mrb[0].mxu1 }
 0x26f   : > { %526 = vrot.lane.b32.xlu0 %v479_v5, %s3421_s10  ;;  %506 = vrot.lane.b32.xlu1 %v3659_v9, %s3420_s19  ;;  %v3664_v10 = vpop.f32.mrb[1].mxu1 }
 0x270   : > { %v3666_v11 = vpop.f32.mrb[2].mxu1 }
 0x271   : > { %v3668_v12 = vpop.f32.mrb[3].mxu1 }
 0x273   : > { %504 = vrot.lane.b32.xlu0 %v3655_v7, %s3420_s19  ;;  %514 = vrot.lane.b32.xlu1 %v479_v5, %s3422_s11 }
 0x277   : > { %516 = vrot.lane.b32.xlu0 %v3655_v7, %s3422_s11  ;;  %518 = vrot.lane.b32.xlu1 %v3659_v9, %s3422_s11 }
 0x27b   : > { %528 = vrot.lane.b32.xlu0 %v3655_v7, %s3421_s10  ;;  %530 = vrot.lane.b32.xlu1 %v3659_v9, %s3421_s10 }
 0x27f   : > { %1163 = vrot.lane.b32.xlu0 %v479_v5, %s3423_s30  ;;  %508 = vrot.lane.b32.xlu1 %v3666_v11, %s3420_s19 }
 0x283   : > { %1165 = vrot.lane.b32.xlu0 %v3655_v7, %s3423_s30  ;;  %520 = vrot.lane.b32.xlu1 %v3666_v11, %s3422_s11 }
 0x287   : > { %532 = vrot.lane.b32.xlu1 %v3666_v11, %s3421_s10 }
 0x28b   : > { %1167 = vrot.lane.b32.xlu1 %v3659_v9, %s3423_s30 }
 0x28f   : > { %1169 = vrot.lane.b32.xlu1 %v3666_v11, %s3423_s30 }
 0x2dd   : > { %v503_v16 = vpop.permute.xlu0 %502 }
 0x2de   : > { %1171 = vrot.lane.b32.xlu0 %v503_v16, %s3423_s30 }
 0x2e1   : > { %v507_v21 = vpop.permute.xlu1 %506  ;;  %v527_v22 = vpop.permute.xlu0 %526 }
 0x2e2   : > { %1175 = vrot.lane.b32.xlu1 %v507_v21, %s3423_s30  ;;  %v554_v25 = vcombine.low %v503_v16, %v527_v22  ;;  %v555_v26 = vcombine.high %v503_v16, %v527_v22 }
 0x2e4   : > { %v562_v32 = vrot.slane %v554_v25, %v3696_v24  ;;  %v569_v33 = vrot.slane %v555_v26, %v3696_v24 }
 0x2e5   : > { %v515_v27 = vpop.permute.xlu1 %514  ;;  %v505_v28 = vpop.permute.xlu0 %504 }
 0x2e6   : > { %v538_v29 = vcombine.low %v479_v5, %v515_v27  ;;  %v539_v30 = vcombine.high %v479_v5, %v515_v27  ;;  %1179 = vrot.lane.b32.xlu0 %v515_v27, %s3423_s30 }
 0x2e8   : > { %v546_v34 = vrot.slane %v538_v29, %v3696_v24  ;;  %v553_v35 = vrot.slane %v539_v30, %v3696_v24 }
 0x2e9   : > { %v519_v36 = vpop.permute.xlu1 %518  ;;  %v517_v37 = vpop.permute.xlu0 %516 }
 0x2ea   : > { %v570_v38 = vcombine.low %v546_v34, %v562_v32  ;;  %v571_v39 = vcombine.high %v546_v34, %v562_v32  ;;  %v586_v40 = vcombine.low %v553_v35, %v569_v33  ;;  %v587_v41 = vcombine.high %v553_v35, %v569_v33  ;;  %1183 = vrot.lane.b32.xlu1 %v519_v36, %s3423_s30 }
 0x2eb   : > { %v674_v42 = vcombine.low %v3659_v9, %v519_v36  ;;  %v675_v43 = vcombine.high %v3659_v9, %v519_v36  ;;  %v606_v44 = vcombine.low %v3655_v7, %v517_v37  ;;  %v607_v45 = vcombine.high %v3655_v7, %v517_v37  ;;  %1187 = vrot.lane.b32.xlu0 %v527_v22, %s3423_s30 }
 0x2ec   : > { %v578_v46 = vrot.slane %v570_v38, %v3699_v31  ;;  %v585_v47 = vrot.slane %v571_v39, %v3699_v31  ;;  %v594_v48 = vrot.slane %v586_v40, %v3699_v31  ;;  %v601_v49 = vrot.slane %v587_v41, %v3699_v31 }
 0x2ed   : > { %v682_v50 = vrot.slane %v674_v42, %v3696_v24  ;;  %v689_v51 = vrot.slane %v675_v43, %v3696_v24  ;;  %v3719_v52 = vrot.slane %v606_v44, %v3696_v24  ;;  %v3722_v53 = vrot.slane %v607_v45, %v3696_v24  ;;  %v531_v54 = vpop.permute.xlu1 %530  ;;  %v529_v55 = vpop.permute.xlu0 %528 }
 0x2ee   : > { %v810_v56 = vcombine.low %v578_v46, %v585_v47  ;;  %v2964_v57 = vcombine.high %v578_v46, %v585_v47  ;;  %v826_v58 = vcombine.low %v594_v48, %v601_v49  ;;  %v2965_v59 = vcombine.high %v594_v48, %v601_v49  ;;  %1191 = vrot.lane.b32.xlu1 %v531_v54, %s3423_s30 }
 0x2ef   : > { %v690_v60 = vcombine.low %v507_v21, %v531_v54  ;;  %v691_v61 = vcombine.high %v507_v21, %v531_v54  ;;  %v622_v62 = vcombine.low %v505_v28, %v529_v55  ;;  %v623_v63 = vcombine.high %v505_v28, %v529_v55  ;;  %1173 = vrot.lane.b32.xlu0 %v505_v28, %s3423_s30 }
 0x2f0   : > { %v817_v0 = vrot.slane %v810_v56, %v3696_v24  ;;  %v825_v1 = vrot.slane %v2964_v57, %v3696_v24  ;;  %v833_v2 = vrot.slane %v826_v58, %v3696_v24  ;;  %v841_v3 = vrot.slane %v2965_v59, %v3696_v24 }
 0x2f1   : > { %v698_v4 = vrot.slane %v690_v60, %v3696_v24  ;;  %v705_v5 = vrot.slane %v691_v61, %v3696_v24  ;;  %v630_v7 = vrot.slane %v622_v62, %v3696_v24  ;;  %v637_v9 = vrot.slane %v623_v63, %v3696_v24  ;;  %v3739_v13 = vpop.permute.xlu1 %508 }
 0x2f2   : > { %v842_v14 = vcombine.low %v817_v0, %v825_v1  ;;  %v843_v15 = vcombine.high %v817_v0, %v825_v1  ;;  %v858_v16 = vcombine.low %v833_v2, %v841_v3  ;;  %v859_v17 = vcombine.high %v833_v2, %v841_v3  ;;  %1177 = vrot.lane.b32.xlu1 %v3739_v13, %s3423_s30 }
 0x2f3   : > { %v706_v18 = vcombine.low %v682_v50, %v698_v4  ;;  %v707_v19 = vcombine.high %v682_v50, %v698_v4  ;;  %v722_v20 = vcombine.low %v689_v51, %v705_v5  ;;  %v723_v21 = vcombine.high %v689_v51, %v705_v5  ;;  %1181 = vrot.lane.b32.xlu0 %v517_v37, %s3423_s30 }
 0x2f4   : > { %v850_v22 = vrot.slane %v842_v14, %v3699_v31  ;;  %v857_v23 = vrot.slane %v843_v15, %v3699_v31  ;;  %v866_v25 = vrot.slane %v858_v16, %v3699_v31  ;;  %v873_v26 = vrot.slane %v859_v17, %v3699_v31 }
 0x2f5   : > { %v714_v27 = vrot.slane %v706_v18, %v3699_v31  ;;  %v721_v28 = vrot.slane %v707_v19, %v3699_v31  ;;  %v730_v29 = vrot.slane %v722_v20, %v3699_v31  ;;  %v737_v30 = vrot.slane %v723_v21, %v3699_v31  ;;  %v3753_v32 = vpop.permute.xlu1 %520 }
 0x2f6   : > { %v874_v33 = vcombine.low %v850_v22, %v866_v25  ;;  %v875_v34 = vcombine.high %v850_v22, %v866_v25  ;;  %v876_v35 = vcombine.low %v857_v23, %v873_v26  ;;  %v877_v36 = vcombine.high %v857_v23, %v873_v26  ;;  %1185 = vrot.lane.b32.xlu1 %v3753_v32, %s3423_s30 }
 0x2f7   : > { %v946_v37 = vcombine.low %v714_v27, %v721_v28  ;;  %v2968_v38 = vcombine.high %v714_v27, %v721_v28  ;;  %v962_v39 = vcombine.low %v730_v29, %v737_v30  ;;  %v2969_v40 = vcombine.high %v730_v29, %v737_v30  ;;  %1189 = vrot.lane.b32.xlu0 %v529_v55, %s3423_s30 }
 0x2f8   : > { %v3046_v41 = vpack.c.bf16 %v874_v33, %v874_v33  ;;  %v3050_v42 = vpack.c.bf16 %v875_v34, %v875_v34  ;;  %v3054_v43 = vpack.c.bf16 %v876_v35, %v876_v35  ;;  %v3058_v44 = vpack.c.bf16 %v877_v36, %v877_v36 }
 0x2f9   : > { %v953_v45 = vrot.slane %v946_v37, %v3696_v24  ;;  %v961_v46 = vrot.slane %v2968_v38, %v3696_v24  ;;  %v969_v47 = vrot.slane %v962_v39, %v3696_v24  ;;  %v977_v48 = vrot.slane %v2969_v40, %v3696_v24  ;;  %v533_v19 = vpop.permute.xlu1 %532 }
 0x2fa   : > { %1147 = vst.msk [vmem:[%s3760_s7] sm:$0xf] %vm1146_vm1, %v3046_v41  ;;  %1151 = vst.msk [vmem:[%s3760_s7 + $0x10] sm:$0xf] %vm1146_vm1, %v3050_v42  ;;  %v638_v49 = vcombine.low %v3719_v52, %v630_v7  ;;  %v639_v50 = vcombine.high %v3719_v52, %v630_v7  ;;  %v654_v51 = vcombine.low %v3722_v53, %v637_v9  ;;  %2095 = vrot.lane.b32.xlu1 %v3653_v6, %s3420_s19 }
 0x2fb   : > { %1155 = vst.msk [vmem:[%s3760_s7 + $0x20] sm:$0xf] %vm1146_vm1, %v3054_v43  ;;  %1159 = vst.msk [vmem:[%s3760_s7 + $0x30] sm:$0xf] %vm1146_vm1, %v3058_v44  ;;  %v655_v54 = vcombine.high %v3722_v53, %v637_v9  ;;  %v978_v55 = vcombine.low %v953_v45, %v961_v46  ;;  %v979_v56 = vcombine.high %v953_v45, %v961_v46  ;;  %2119 = vrot.lane.b32.xlu0 %v3653_v6, %s3421_s10 }
 0x2fc   : > { %v994_v57 = vcombine.low %v969_v47, %v977_v48  ;;  %v995_v58 = vcombine.high %v969_v47, %v977_v48  ;;  %v646_v59 = vrot.slane %v638_v49, %v3699_v31  ;;  %v653_v60 = vrot.slane %v639_v50, %v3699_v31 }
 0x2fd   : > { %v662_v52 = vrot.slane %v654_v51, %v3699_v31  ;;  %v669_v61 = vrot.slane %v655_v54, %v3699_v31  ;;  %v986_v53 = vrot.slane %v978_v55, %v3699_v31  ;;  %v993_v62 = vrot.slane %v979_v56, %v3699_v31 }
 0x2fe   : > { %v1002_v63 = vrot.slane %v994_v57, %v3699_v31  ;;  %v1009_v0 = vrot.slane %v995_v58, %v3699_v31  ;;  %v878_v1 = vcombine.low %v646_v59, %v653_v60  ;;  %v2966_v2 = vcombine.high %v646_v59, %v653_v60  ;;  %2097 = vrot.lane.b32.xlu1 %v3657_v8, %s3420_s19 }
 0x2ff   : > { %v894_v3 = vcombine.low %v662_v52, %v669_v61  ;;  %v2967_v4 = vcombine.high %v662_v52, %v669_v61  ;;  %v742_v29 = vcombine.low %v3666_v11, %v3753_v32  ;;  %v743_v30 = vcombine.high %v3666_v11, %v3753_v32 }
 0x300   : > { %v1010_v5 = vcombine.low %v986_v53, %v1002_v63  ;;  %v1011_v7 = vcombine.high %v986_v53, %v1002_v63  ;;  %v1012_v9 = vcombine.low %v993_v62, %v1009_v0  ;;  %v1013_v14 = vcombine.high %v993_v62, %v1009_v0 }
 0x301   : > { %v885_v15 = vrot.slane %v878_v1, %v3696_v24  ;;  %v893_v16 = vrot.slane %v2966_v2, %v3696_v24  ;;  %v901_v17 = vrot.slane %v894_v3, %v3696_v24  ;;  %v909_v18 = vrot.slane %v2967_v4, %v3696_v24 }
 0x302   : > { %v3048_v20 = vpack.c.bf16 %v1010_v5, %v1010_v5  ;;  %v3052_v21 = vpack.c.bf16 %v1011_v7, %v1011_v7  ;;  %v3056_v22 = vpack.c.bf16 %v1012_v9, %v1012_v9  ;;  %v3060_v23 = vpack.c.bf16 %v1013_v14, %v1013_v14  ;;  %2099 = vrot.lane.b32.xlu1 %v3664_v10, %s3420_s19 }
 0x303   : > { %v910_v25 = vcombine.low %v885_v15, %v893_v16  ;;  %v911_v26 = vcombine.high %v885_v15, %v893_v16  ;;  %v926_v27 = vcombine.low %v901_v17, %v909_v18  ;;  %v927_v28 = vcombine.high %v901_v17, %v909_v18 }
 0x304   : > { %1149 = vst.msk [vmem:[%s3760_s7 + $0x8] sm:$0xf] %vm1146_vm1, %v3048_v20  ;;  %1153 = vst.msk [vmem:[%s3760_s7 + $0x18] sm:$0xf] %vm1146_vm1, %v3052_v21  ;;  %v758_v33 = vcombine.low %v3739_v13, %v533_v19  ;;  %v759_v34 = vcombine.high %v3739_v13, %v533_v19  ;;  %v750_v39 = vrot.slane %v742_v29, %v3696_v24 }
 0x305   : > { %1157 = vst.msk [vmem:[%s3760_s7 + $0x28] sm:$0xf] %vm1146_vm1, %v3056_v22  ;;  %1161 = vst.msk [vmem:[%s3760_s7 + $0x38] sm:$0xf] %vm1146_vm1, %v3060_v23  ;;  %v918_v35 = vrot.slane %v910_v25, %v3699_v31  ;;  %v925_v36 = vrot.slane %v911_v26, %v3699_v31  ;;  %v934_v37 = vrot.slane %v926_v27, %v3699_v31  ;;  %v1164_v22 = vpop.permute.xlu0 %1163  ;;  %v1168_v23 = vpop.permute.xlu1 %1167 }
 0x306   : > { %v941_v38 = vrot.slane %v927_v28, %v3699_v31  ;;  %v757_v40 = vrot.slane %v743_v30, %v3696_v24  ;;  %v766_v41 = vrot.slane %v758_v33, %v3696_v24  ;;  %v773_v11 = vrot.slane %v759_v34, %v3696_v24  ;;  %2101 = vrot.lane.b32.xlu1 %v3668_v12, %s3420_s19 }
 0x307   : > { %v942_v32 = vcombine.low %v918_v35, %v934_v37  ;;  %v943_v42 = vcombine.high %v918_v35, %v934_v37 }
 0x308   : > { %v944_v13 = vcombine.low %v925_v36, %v941_v38  ;;  %v945_v43 = vcombine.high %v925_v36, %v941_v38  ;;  %v774_v44 = vcombine.low %v750_v39, %v766_v41  ;;  %v775_v45 = vcombine.high %v750_v39, %v766_v41 }
 0x309   : > { %v790_v46 = vcombine.low %v757_v40, %v773_v11  ;;  %v791_v47 = vcombine.high %v757_v40, %v773_v11  ;;  %v3047_v48 = vpack.c.bf16 %v942_v32, %v942_v32  ;;  %v3051_v49 = vpack.c.bf16 %v943_v42, %v943_v42  ;;  %v1166_v25 = vpop.permute.xlu0 %1165  ;;  %v3866_v26 = vpop.permute.xlu1 %1169 }
 0x30a   : > { %v3055_v50 = vpack.c.bf16 %v944_v13, %v944_v13  ;;  %v3059_v51 = vpack.c.bf16 %v945_v43, %v945_v43  ;;  %v782_v54 = vrot.slane %v774_v44, %v3699_v31  ;;  %v789_v55 = vrot.slane %v775_v45, %v3699_v31  ;;  %2107 = vrot.lane.b32.xlu1 %v3653_v6, %s3422_s11 }
 0x30b   : > { %v798_v56 = vrot.slane %v790_v46, %v3699_v31  ;;  %v805_v57 = vrot.slane %v791_v47, %v3699_v31  ;;  %1148 = vst.msk [vmem:[%s3760_s7 + $0x4] sm:$0xf] %vm1146_vm1, %v3047_v48  ;;  %1152 = vst.msk [vmem:[%s3760_s7 + $0x14] sm:$0xf] %vm1146_vm1, %v3051_v49 }
 0x30c   : > { %1156 = vst.msk [vmem:[%s3760_s7 + $0x24] sm:$0xf] %vm1146_vm1, %v3055_v50  ;;  %1160 = vst.msk [vmem:[%s3760_s7 + $0x34] sm:$0xf] %vm1146_vm1, %v3059_v51  ;;  %v1014_v58 = vcombine.low %v782_v54, %v789_v55  ;;  %v2970_v59 = vcombine.high %v782_v54, %v789_v55 }
 0x30d   : > { %v1030_v60 = vcombine.low %v798_v56, %v805_v57  ;;  %v2971_v52 = vcombine.high %v798_v56, %v805_v57 }
 0x30e   : > { %v1021_v61 = vrot.slane %v1014_v58, %v3696_v24  ;;  %v1029_v53 = vrot.slane %v2970_v59, %v3696_v24  ;;  %1193 = vrot.lane.b32.xlu1 %v533_v19, %s3423_s30 }
 0x30f   : > { %v1037_v62 = vrot.slane %v1030_v60, %v3696_v24  ;;  %v1045_v63 = vrot.slane %v2971_v52, %v3696_v24 }
 0x310   : > { %v1046_v0 = vcombine.low %v1021_v61, %v1029_v53  ;;  %v1047_v1 = vcombine.high %v1021_v61, %v1029_v53 }
 0x311   : > { %v1062_v2 = vcombine.low %v1037_v62, %v1045_v63  ;;  %v1063_v3 = vcombine.high %v1037_v62, %v1045_v63 }
 0x312   : > { %v1054_v4 = vrot.slane %v1046_v0, %v3699_v31  ;;  %v1061_v5 = vrot.slane %v1047_v1, %v3699_v31  ;;  %2109 = vrot.lane.b32.xlu1 %v3657_v8, %s3422_s11 }
 0x313   : > { %v1070_v7 = vrot.slane %v1062_v2, %v3699_v31  ;;  %v1077_v9 = vrot.slane %v1063_v3, %v3699_v31 }
 0x315   : > { %v1078_v14 = vcombine.low %v1054_v4, %v1070_v7  ;;  %v1079_v15 = vcombine.high %v1054_v4, %v1070_v7  ;;  %v1080_v16 = vcombine.low %v1061_v5, %v1077_v9  ;;  %v1081_v17 = vcombine.high %v1061_v5, %v1077_v9 }
 0x316   : > { %2111 = vrot.lane.b32.xlu1 %v3664_v10, %s3422_s11 }
 0x317   : > { %v3049_v18 = vpack.c.bf16 %v1078_v14, %v1078_v14  ;;  %v3053_v19 = vpack.c.bf16 %v1079_v15, %v1079_v15  ;;  %v3057_v20 = vpack.c.bf16 %v1080_v16, %v1080_v16  ;;  %v3061_v21 = vpack.c.bf16 %v1081_v17, %v1081_v17 }
 0x319   : > { %1150 = vst.msk [vmem:[%s3760_s7 + $0xc] sm:$0xf] %vm1146_vm1, %v3049_v18  ;;  %1154 = vst.msk [vmem:[%s3760_s7 + $0x1c] sm:$0xf] %vm1146_vm1, %v3053_v19 }
 0x31a   : > { %1158 = vst.msk [vmem:[%s3760_s7 + $0x2c] sm:$0xf] %vm1146_vm1, %v3057_v20  ;;  %1162 = vst.msk [vmem:[%s3760_s7 + $0x3c] sm:$0xf] %vm1146_vm1, %v3061_v21  ;;  %2113 = vrot.lane.b32.xlu1 %v3668_v12, %s3422_s11  ;;  %s2766_s11 = scalar_lea.sflag [#allocation9], %s3609_s12 }
 0x31e   : > { %2121 = vrot.lane.b32.xlu1 %v3657_v8, %s3421_s10 }
 0x322   : > { %2123 = vrot.lane.b32.xlu1 %v3664_v10, %s3421_s10 }
 0x326   : > { %2125 = vrot.lane.b32.xlu1 %v3668_v12, %s3421_s10  ;;  %s4091_s10 = scalar_lea.hbm %s4227_s6, %s3094_s29 }
 0x350   : > { %v1172_v27 = vpop.permute.xlu0 %1171 }
 0x354   : > { %v1176_v28 = vpop.permute.xlu1 %1175 }
 0x358   : > { %v1180_v29 = vpop.permute.xlu0 %1179 }
 0x359   : > { %v1211_v30 = vcombine.low %v1164_v22, %v1180_v29  ;;  %v1212_v33 = vcombine.high %v1164_v22, %v1180_v29 }
 0x35b   : > { %v1219_v40 = vrot.slane %v1211_v30, %v3696_v24  ;;  %v1226_v41 = vrot.slane %v1212_v33, %v3696_v24 }
 0x35c   : > { %v1184_v34 = vpop.permute.xlu1 %1183 }
 0x35d   : > { %v1188_v35 = vpop.permute.xlu0 %1187  ;;  %v1347_v38 = vcombine.low %v1168_v23, %v1184_v34  ;;  %v1348_v39 = vcombine.high %v1168_v23, %v1184_v34 }
 0x35e   : > { %v1227_v36 = vcombine.low %v1172_v27, %v1188_v35  ;;  %v1228_v37 = vcombine.high %v1172_v27, %v1188_v35 }
 0x35f   : > { %v1355_v49 = vrot.slane %v1347_v38, %v3696_v24  ;;  %v1362_v50 = vrot.slane %v1348_v39, %v3696_v24 }
 0x360   : > { %v1235_v11 = vrot.slane %v1227_v36, %v3696_v24  ;;  %v1242_v32 = vrot.slane %v1228_v37, %v3696_v24  ;;  %v1192_v42 = vpop.permute.xlu1 %1191 }
 0x361   : > { %v1363_v13 = vcombine.low %v1176_v28, %v1192_v42  ;;  %v1364_v43 = vcombine.high %v1176_v28, %v1192_v42  ;;  %v1174_v44 = vpop.permute.xlu0 %1173 }
 0x362   : > { %v1243_v45 = vcombine.low %v1219_v40, %v1235_v11  ;;  %v1244_v46 = vcombine.high %v1219_v40, %v1235_v11  ;;  %v1259_v47 = vcombine.low %v1226_v41, %v1242_v32  ;;  %v1260_v48 = vcombine.high %v1226_v41, %v1242_v32 }
 0x363   : > { %v1371_v51 = vrot.slane %v1363_v13, %v3696_v24  ;;  %v1378_v54 = vrot.slane %v1364_v43, %v3696_v24 }
 0x364   : > { %v1251_v55 = vrot.slane %v1243_v45, %v3699_v31  ;;  %v1258_v56 = vrot.slane %v1244_v46, %v3699_v31  ;;  %v1267_v57 = vrot.slane %v1259_v47, %v3699_v31  ;;  %v1274_v58 = vrot.slane %v1260_v48, %v3699_v31  ;;  %v3880_v59 = vpop.permute.xlu1 %1177 }
 0x365   : > { %v1379_v60 = vcombine.low %v1355_v49, %v1371_v51  ;;  %v1380_v52 = vcombine.high %v1355_v49, %v1371_v51  ;;  %v1182_v61 = vpop.permute.xlu0 %1181  ;;  %v1395_v63 = vcombine.low %v1362_v50, %v1378_v54  ;;  %v1396_v0 = vcombine.high %v1362_v50, %v1378_v54 }
 0x366   : > { %v1483_v53 = vcombine.low %v1251_v55, %v1258_v56  ;;  %v2988_v62 = vcombine.high %v1251_v55, %v1258_v56  ;;  %v1499_v1 = vcombine.low %v1267_v57, %v1274_v58  ;;  %v2989_v2 = vcombine.high %v1267_v57, %v1274_v58 }
 0x367   : > { %v1387_v3 = vrot.slane %v1379_v60, %v3699_v31  ;;  %v1394_v4 = vrot.slane %v1380_v52, %v3699_v31  ;;  %v1279_v5 = vcombine.low %v1166_v25, %v1182_v61  ;;  %v1280_v7 = vcombine.high %v1166_v25, %v1182_v61 }
 0x368   : > { %v3884_v9 = vpop.permute.xlu1 %1185  ;;  %v1490_v14 = vrot.slane %v1483_v53, %v3696_v24  ;;  %v1498_v15 = vrot.slane %v2988_v62, %v3696_v24  ;;  %v1403_v17 = vrot.slane %v1395_v63, %v3699_v31  ;;  %v1410_v18 = vrot.slane %v1396_v0, %v3699_v31 }
 0x369   : > { %v1190_v16 = vpop.permute.xlu0 %1189  ;;  %v1619_v19 = vcombine.low %v1387_v3, %v1394_v4  ;;  %v1506_v22 = vrot.slane %v1499_v1, %v3696_v24  ;;  %v1514_v23 = vrot.slane %v2989_v2, %v3696_v24  ;;  %v1287_v25 = vrot.slane %v1279_v5, %v3696_v24 }
 0x36a   : > { %v1295_v20 = vcombine.low %v1174_v44, %v1190_v16  ;;  %v1296_v21 = vcombine.high %v1174_v44, %v1190_v16  ;;  %v1294_v27 = vrot.slane %v1280_v7, %v3696_v24  ;;  %v1516_v29 = vcombine.high %v1490_v14, %v1498_v15 }
 0x36b   : > { %v1515_v30 = vcombine.low %v1490_v14, %v1498_v15  ;;  %v1532_v36 = vcombine.high %v1506_v22, %v1514_v23  ;;  %v1531_v37 = vcombine.low %v1506_v22, %v1514_v23  ;;  %v2992_v38 = vcombine.high %v1387_v3, %v1394_v4 }
 0x36c   : > { %v3894_v28 = vpop.permute.xlu1 %2095  ;;  %v1303_v33 = vrot.slane %v1295_v20, %v3696_v24  ;;  %v1310_v34 = vrot.slane %v1296_v21, %v3696_v24  ;;  %v1635_v39 = vcombine.low %v1403_v17, %v1410_v18  ;;  %v1530_v40 = vrot.slane %v1516_v29, %v3699_v31 }
 0x36d   : > { %v3898_v35 = vpop.permute.xlu0 %2119  ;;  %v1523_v41 = vrot.slane %v1515_v30, %v3699_v31  ;;  %v2993_v43 = vcombine.high %v1403_v17, %v1410_v18  ;;  %v1546_v46 = vrot.slane %v1532_v36, %v3699_v31  ;;  %v1539_v47 = vrot.slane %v1531_v37, %v3699_v31 }
 0x36e   : > { %v1311_v11 = vcombine.low %v1287_v25, %v1303_v33  ;;  %v1312_v32 = vcombine.high %v1287_v25, %v1303_v33  ;;  %v1327_v42 = vcombine.low %v1294_v27, %v1310_v34  ;;  %v1328_v13 = vcombine.high %v1294_v27, %v1310_v34 }
 0x36f   : > { %v2147_v44 = vcombine.low %v3894_v28, %v3898_v35  ;;  %v1549_v54 = vcombine.low %v1530_v40, %v1546_v46  ;;  %v1550_v55 = vcombine.high %v1530_v40, %v1546_v46  ;;  %v1547_v56 = vcombine.low %v1523_v41, %v1539_v47 }
 0x370   : > { %v3904_v45 = vpop.permute.xlu1 %2097  ;;  %v1319_v48 = vrot.slane %v1311_v11, %v3699_v31  ;;  %v1326_v49 = vrot.slane %v1312_v32, %v3699_v31  ;;  %v1335_v50 = vrot.slane %v1327_v42, %v3699_v31  ;;  %v1342_v51 = vrot.slane %v1328_v13, %v3699_v31 }
 0x371   : > { %v1548_v57 = vcombine.high %v1523_v41, %v1539_v47  ;;  %v3191_v53 = vpack.i.bf16 %v1550_v55, %v1549_v54  ;;  %v1626_v0 = vrot.slane %v1619_v19, %v3696_v24  ;;  %v1634_v1 = vrot.slane %v2992_v38, %v3696_v24 }
 0x372   : > { %v1551_v58 = vcombine.low %v1319_v48, %v1326_v49  ;;  %v2990_v60 = vcombine.high %v1319_v48, %v1326_v49  ;;  %v1567_v52 = vcombine.low %v1335_v50, %v1342_v51  ;;  %v2991_v61 = vcombine.high %v1335_v50, %v1342_v51 }
 0x373   : > { %v3177_v62 = vpack.i.bf16 %v1548_v57, %v1547_v56  ;;  %3192 = vxpose.xlu1.b32.start [1/2] (short) (narrow) %v3191_v53, 16  ;;  %v1642_v7 = vrot.slane %v1635_v39, %v3696_v24  ;;  %v1650_v14 = vrot.slane %v2993_v43, %v3696_v24  ;;  %v1652_v15 = vcombine.high %v1626_v0, %v1634_v1 }
 0x374   : > { %v3912_v63 = vpop.permute.xlu1 %2099  ;;  %v1558_v2 = vrot.slane %v1551_v58, %v3696_v24  ;;  %v1566_v3 = vrot.slane %v2990_v60, %v3696_v24  ;;  %v1574_v4 = vrot.slane %v1567_v52, %v3696_v24  ;;  %v1582_v5 = vrot.slane %v2991_v61, %v3696_v24 }
 0x375   : > { %3178 = vxpose.xlu0.b32.start [1/2] (short) (narrow) %v3177_v62, 16  ;;  %v1666_v21 = vrot.slane %v1652_v15, %v3699_v31  ;;  %v1668_v22 = vcombine.high %v1642_v7, %v1650_v14  ;;  %v1651_v23 = vcombine.low %v1626_v0, %v1634_v1  ;;  %v1667_v25 = vcombine.low %v1642_v7, %v1650_v14 }
 0x376   : > { %v1584_v16 = vcombine.high %v1558_v2, %v1566_v3  ;;  %v1600_v17 = vcombine.high %v1574_v4, %v1582_v5  ;;  %v1583_v18 = vcombine.low %v1558_v2, %v1566_v3  ;;  %v1599_v19 = vcombine.low %v1574_v4, %v1582_v5 }
 0x377   : > { %v2148_v34 = vcombine.high %v3894_v28, %v3898_v35  ;;  %v1682_v36 = vrot.slane %v1668_v22, %v3699_v31  ;;  %v1659_v37 = vrot.slane %v1651_v23, %v3699_v31  ;;  %v1675_v38 = vrot.slane %v1667_v25, %v3699_v31 }
 0x378   : > { %v3922_v20 = vpop.permute.xlu1 %2101  ;;  %v1598_v27 = vrot.slane %v1584_v16, %v3699_v31  ;;  %v1614_v29 = vrot.slane %v1600_v17, %v3699_v31  ;;  %v1591_v30 = vrot.slane %v1583_v18, %v3699_v31  ;;  %v1607_v33 = vrot.slane %v1599_v19, %v3699_v31 }
 0x379   : > { %v1685_v42 = vcombine.low %v1666_v21, %v1682_v36  ;;  %v1686_v13 = vcombine.high %v1666_v21, %v1682_v36  ;;  %v2155_v28 = vrot.slane %v2147_v44, %v3696_v24  ;;  %v1683_v35 = vcombine.low %v1659_v37, %v1675_v38 }
 0x37a   : > { %v1617_v39 = vcombine.low %v1598_v27, %v1614_v29  ;;  %v1618_v40 = vcombine.high %v1598_v27, %v1614_v29  ;;  %v1615_v41 = vcombine.low %v1591_v30, %v1607_v33  ;;  %v1616_v11 = vcombine.high %v1591_v30, %v1607_v33 }
 0x37b   : > { %v1684_v49 = vcombine.high %v1659_v37, %v1675_v38  ;;  %v2162_v50 = vrot.slane %v2148_v34, %v3696_v24  ;;  %v1415_v55 = vcombine.low %v3866_v26, %v3884_v9  ;;  %v3219_v57 = vpack.i.bf16 %v1686_v13, %v1685_v42 }
 0x37c   : > { %v2108_v32 = vpop.permute.xlu1 %2107  ;;  %v3193_v47 = vpack.i.bf16 %v1618_v40, %v1617_v39  ;;  %v3179_v48 = vpack.i.bf16 %v1616_v11, %v1615_v41 }
 0x37d   : > { %v2131_v43 = vcombine.low %v3653_v6, %v2108_v32  ;;  %v2132_v46 = vcombine.high %v3653_v6, %v2108_v32  ;;  %v1416_v6 = vcombine.high %v3866_v26, %v3884_v9  ;;  %v3205_v62 = vpack.i.bf16 %v1684_v49, %v1683_v35 }
 0x37e   : > { %3194 = vxpose.xlu1.b32.end [2/2] (short) (narrow) %v3193_v47, 16  ;;  %3180 = vxpose.xlu0.b32.end [2/2] (short) (narrow) %v3179_v48, 16  ;;  %v1423_v26 = vrot.slane %v1415_v55, %v3696_v24 }
 0x37f   : > { %v2139_v51 = vrot.slane %v2131_v43, %v3696_v24  ;;  %v2146_v54 = vrot.slane %v2132_v46, %v3696_v24  ;;  %v1430_v9 = vrot.slane %v1416_v6, %v3696_v24 }
 0x380   : > { %v1194_v56 = vpop.permute.xlu1 %1193 }
 0x381   : > { %v2163_v58 = vcombine.low %v2139_v51, %v2155_v28  ;;  %v2164_v44 = vcombine.high %v2139_v51, %v2155_v28  ;;  %v2179_v60 = vcombine.low %v2146_v54, %v2162_v50  ;;  %v2180_v52 = vcombine.high %v2146_v54, %v2162_v50 }
 0x382   : > { %v1431_v61 = vcombine.low %v3880_v59, %v1194_v56  ;;  %v1432_v53 = vcombine.high %v3880_v59, %v1194_v56  ;;  %3220 = vxpose.xlu1.b32.start [1/2] (short) (narrow) %v3219_v57, 16  ;;  %3206 = vxpose.xlu0.b32.start [1/2] (short) (narrow) %v3205_v62, 16 }
 0x383   : > { %v2171_v0 = vrot.slane %v2163_v58, %v3699_v31  ;;  %v2178_v1 = vrot.slane %v2164_v44, %v3699_v31  ;;  %v2187_v2 = vrot.slane %v2179_v60, %v3699_v31  ;;  %v2194_v3 = vrot.slane %v2180_v52, %v3699_v31 }
 0x384   : > { %v1439_v4 = vrot.slane %v1431_v61, %v3696_v24  ;;  %v1446_v5 = vrot.slane %v1432_v53, %v3696_v24  ;;  %v2110_v59 = vpop.permute.xlu1 %2109 }
 0x385   : > { %v2403_v7 = vcombine.low %v2171_v0, %v2178_v1  ;;  %v3012_v14 = vcombine.high %v2171_v0, %v2178_v1  ;;  %v2419_v15 = vcombine.low %v2187_v2, %v2194_v3  ;;  %v3013_v16 = vcombine.high %v2187_v2, %v2194_v3 }
 0x386   : > { %v1447_v17 = vcombine.low %v1423_v26, %v1439_v4  ;;  %v1448_v18 = vcombine.high %v1423_v26, %v1439_v4  ;;  %v1463_v19 = vcombine.low %v1430_v9, %v1446_v5  ;;  %v1464_v21 = vcombine.high %v1430_v9, %v1446_v5 }
 0x387   : > { %v2410_v22 = vrot.slane %v2403_v7, %v3696_v24  ;;  %v2418_v23 = vrot.slane %v3012_v14, %v3696_v24  ;;  %v2426_v25 = vrot.slane %v2419_v15, %v3696_v24  ;;  %v2434_v27 = vrot.slane %v3013_v16, %v3696_v24 }
 0x388   : > { %v1455_v29 = vrot.slane %v1447_v17, %v3699_v31  ;;  %v1462_v30 = vrot.slane %v1448_v18, %v3699_v31  ;;  %v1471_v33 = vrot.slane %v1463_v19, %v3699_v31  ;;  %v1478_v34 = vrot.slane %v1464_v21, %v3699_v31  ;;  %v2112_v36 = vpop.permute.xlu1 %2111 }
 0x389   : > { %v2435_v37 = vcombine.low %v2410_v22, %v2418_v23  ;;  %v2436_v38 = vcombine.high %v2410_v22, %v2418_v23  ;;  %v2451_v39 = vcombine.low %v2426_v25, %v2434_v27  ;;  %v2452_v40 = vcombine.high %v2426_v25, %v2434_v27 }
 0x38a   : > { %v1687_v41 = vcombine.low %v1455_v29, %v1462_v30  ;;  %v2994_v11 = vcombine.high %v1455_v29, %v1462_v30  ;;  %v1703_v32 = vcombine.low %v1471_v33, %v1478_v34  ;;  %v2995_v42 = vcombine.high %v1471_v33, %v1478_v34 }
 0x38b   : > { %v2443_v13 = vrot.slane %v2435_v37, %v3699_v31  ;;  %v2450_v43 = vrot.slane %v2436_v38, %v3699_v31  ;;  %v2459_v46 = vrot.slane %v2451_v39, %v3699_v31  ;;  %v2466_v47 = vrot.slane %v2452_v40, %v3699_v31 }
 0x38c   : > { %v1694_v48 = vrot.slane %v1687_v41, %v3696_v24  ;;  %v1702_v28 = vrot.slane %v2994_v11, %v3696_v24  ;;  %v1710_v35 = vrot.slane %v1703_v32, %v3696_v24  ;;  %v1718_v49 = vrot.slane %v2995_v42, %v3696_v24  ;;  %v3971_v50 = vpop.permute.xlu1 %2113 }
 0x38d   : > { %v2467_v51 = vcombine.low %v2443_v13, %v2459_v46  ;;  %v2468_v54 = vcombine.high %v2443_v13, %v2459_v46  ;;  %v2469_v55 = vcombine.low %v2450_v43, %v2466_v47  ;;  %v2470_v6 = vcombine.high %v2450_v43, %v2466_v47 }
 0x38e   : > { %v2199_v56 = vcombine.low %v3657_v8, %v2110_v59  ;;  %v2200_v57 = vcombine.high %v3657_v8, %v2110_v59  ;;  %v2267_v58 = vcombine.low %v3664_v10, %v2112_v36  ;;  %v2268_v44 = vcombine.high %v3664_v10, %v2112_v36 }
 0x38f   : > { %v3078_v60 = vpack.c.bf16 %v2467_v51, %v2467_v51  ;;  %v3080_v52 = vpack.c.bf16 %v2468_v54, %v2468_v54  ;;  %v3082_v61 = vpack.c.bf16 %v2469_v55, %v2469_v55  ;;  %v3084_v53 = vpack.c.bf16 %v2470_v6, %v2470_v6 }
 0x390   : > { %v2207_v62 = vrot.slane %v2199_v56, %v3696_v24  ;;  %v2214_v0 = vrot.slane %v2200_v57, %v3696_v24  ;;  %v2122_v1 = vpop.permute.xlu1 %2121  ;;  %v2275_v8 = vrot.slane %v2267_v58, %v3696_v24  ;;  %v2282_v10 = vrot.slane %v2268_v44, %v3696_v24 }
 0x391   : > { %2739 = vst.msk [vmem:[%s3981_s27] sm:$0xf] %vm1146_vm1, %v3078_v60  ;;  %2741 = vst.msk [vmem:[%s3981_s27 + $0x8] sm:$0xf] %vm1146_vm1, %v3080_v52  ;;  %v2215_v2 = vcombine.low %v3904_v45, %v2122_v1  ;;  %v2216_v3 = vcombine.high %v3904_v45, %v2122_v1  ;;  %v1720_v26 = vcombine.high %v1694_v48, %v1702_v28 }
 0x392   : > { %2743 = vst.msk [vmem:[%s3981_s27 + $0x10] sm:$0xf] %vm1146_vm1, %v3082_v61  ;;  %2745 = vst.msk [vmem:[%s3981_s27 + $0x18] sm:$0xf] %vm1146_vm1, %v3084_v53  ;;  %v1736_v9 = vcombine.high %v1710_v35, %v1718_v49  ;;  %v1719_v4 = vcombine.low %v1694_v48, %v1702_v28  ;;  %v1735_v5 = vcombine.low %v1710_v35, %v1718_v49 }
 0x393   : > { %v2335_v59 = vcombine.low %v3668_v12, %v3971_v50  ;;  %v2336_v7 = vcombine.high %v3668_v12, %v3971_v50  ;;  %v2223_v14 = vrot.slane %v2215_v2, %v3696_v24  ;;  %v2230_v15 = vrot.slane %v2216_v3, %v3696_v24 }
 0x394   : > { %v2124_v16 = vpop.permute.xlu1 %2123  ;;  %v1734_v17 = vrot.slane %v1720_v26, %v3699_v31  ;;  %v1750_v18 = vrot.slane %v1736_v9, %v3699_v31  ;;  %v4004_v45 = vrot.slane %v1719_v4, %v3699_v31  ;;  %v4007_v19 = vrot.slane %v1735_v5, %v3699_v31 }
 0x395   : > { %v2231_v21 = vcombine.low %v2207_v62, %v2223_v14  ;;  %v2232_v22 = vcombine.high %v2207_v62, %v2223_v14  ;;  %v2247_v23 = vcombine.low %v2214_v0, %v2230_v15  ;;  %v2248_v25 = vcombine.high %v2214_v0, %v2230_v15 }
 0x396   : > { %v2283_v27 = vcombine.low %v3912_v63, %v2124_v16  ;;  %v2284_v29 = vcombine.high %v3912_v63, %v2124_v16  ;;  %v1753_v30 = vcombine.low %v1734_v17, %v1750_v18  ;;  %v1754_v33 = vcombine.high %v1734_v17, %v1750_v18 }
 0x397   : > { %v2239_v34 = vrot.slane %v2231_v21, %v3699_v31  ;;  %v2246_v36 = vrot.slane %v2232_v22, %v3699_v31  ;;  %v2255_v37 = vrot.slane %v2247_v23, %v3699_v31  ;;  %v2262_v38 = vrot.slane %v2248_v25, %v3699_v31 }
 0x398   : > { %v2291_v39 = vrot.slane %v2283_v27, %v3696_v24  ;;  %v2298_v40 = vrot.slane %v2284_v29, %v3696_v24  ;;  %v3221_v41 = vpack.i.bf16 %v1754_v33, %v1753_v30  ;;  %v1751_v11 = vcombine.low %v4004_v45, %v4007_v19  ;;  %v2126_v22 = vpop.permute.xlu1 %2125 }
 0x399   : > { %v2471_v32 = vcombine.low %v2239_v34, %v2246_v36  ;;  %v3014_v63 = vcombine.high %v2239_v34, %v2246_v36  ;;  %v2487_v42 = vcombine.low %v2255_v37, %v2262_v38  ;;  %v3015_v13 = vcombine.high %v2255_v37, %v2262_v38 }
 0x39a   : > { %v2299_v43 = vcombine.low %v2275_v8, %v2291_v39  ;;  %v2300_v46 = vcombine.high %v2275_v8, %v2291_v39  ;;  %v2315_v47 = vcombine.low %v2282_v10, %v2298_v40  ;;  %v2316_v48 = vcombine.high %v2282_v10, %v2298_v40  ;;  %3222 = vxpose.xlu1.b32.end [2/2] (short) (narrow) %v3221_v41, 16 }
 0x39b   : > { %v2478_v28 = vrot.slane %v2471_v32, %v3696_v24  ;;  %v2486_v35 = vrot.slane %v3014_v63, %v3696_v24  ;;  %v2494_v49 = vrot.slane %v2487_v42, %v3696_v24  ;;  %v2502_v51 = vrot.slane %v3015_v13, %v3696_v24 }
 0x39c   : > { %v2307_v54 = vrot.slane %v2299_v43, %v3699_v31  ;;  %v2314_v55 = vrot.slane %v2300_v46, %v3699_v31  ;;  %v2323_v6 = vrot.slane %v2315_v47, %v3699_v31  ;;  %v2330_v56 = vrot.slane %v2316_v48, %v3699_v31 }
 0x39d   : > { %v2503_v57 = vcombine.low %v2478_v28, %v2486_v35  ;;  %v2504_v58 = vcombine.high %v2478_v28, %v2486_v35  ;;  %v2519_v44 = vcombine.low %v2494_v49, %v2502_v51  ;;  %v2520_v60 = vcombine.high %v2494_v49, %v2502_v51 }
 0x39e   : > { %v2539_v52 = vcombine.low %v2307_v54, %v2314_v55  ;;  %v3016_v61 = vcombine.high %v2307_v54, %v2314_v55  ;;  %v2555_v53 = vcombine.low %v2323_v6, %v2330_v56  ;;  %v3017_v62 = vcombine.high %v2323_v6, %v2330_v56 }
 0x39f   : > { %v2511_v0 = vrot.slane %v2503_v57, %v3699_v31  ;;  %v2518_v1 = vrot.slane %v2504_v58, %v3699_v31  ;;  %v2527_v8 = vrot.slane %v2519_v44, %v3699_v31  ;;  %v2534_v10 = vrot.slane %v2520_v60, %v3699_v31 }
 0x3a0   : > { %v2546_v2 = vrot.slane %v2539_v52, %v3696_v24  ;;  %v2554_v3 = vrot.slane %v3016_v61, %v3696_v24  ;;  %v2562_v26 = vrot.slane %v2555_v53, %v3696_v24  ;;  %v2570_v9 = vrot.slane %v3017_v62, %v3696_v24 }
 0x3a1   : > { %v2535_v4 = vcombine.low %v2511_v0, %v2527_v8  ;;  %v2536_v5 = vcombine.high %v2511_v0, %v2527_v8  ;;  %v2537_v14 = vcombine.low %v2518_v1, %v2534_v10  ;;  %v2538_v15 = vcombine.high %v2518_v1, %v2534_v10 }
 0x3a2   : > { %v2571_v16 = vcombine.low %v2546_v2, %v2554_v3  ;;  %v2572_v17 = vcombine.high %v2546_v2, %v2554_v3  ;;  %v2587_v18 = vcombine.low %v2562_v26, %v2570_v9  ;;  %v2588_v21 = vcombine.high %v2562_v26, %v2570_v9 }
 0x3a3   : > { %v3079_v23 = vpack.c.bf16 %v2535_v4, %v2535_v4  ;;  %v3081_v25 = vpack.c.bf16 %v2536_v5, %v2536_v5  ;;  %v3083_v27 = vpack.c.bf16 %v2537_v14, %v2537_v14  ;;  %v3085_v29 = vpack.c.bf16 %v2538_v15, %v2538_v15 }
 0x3a4   : > { %v2579_v30 = vrot.slane %v2571_v16, %v3699_v31  ;;  %v2586_v33 = vrot.slane %v2572_v17, %v3699_v31  ;;  %v2595_v34 = vrot.slane %v2587_v18, %v3699_v31  ;;  %v2602_v36 = vrot.slane %v2588_v21, %v3699_v31 }
 0x3a5   : > { %v2343_v37 = vrot.slane %v2335_v59, %v3696_v24  ;;  %2740 = vst.msk [vmem:[%s3981_s27 + $0x4] sm:$0xf] %vm1146_vm1, %v3079_v23  ;;  %2742 = vst.msk [vmem:[%s3981_s27 + $0xc] sm:$0xf] %vm1146_vm1, %v3081_v25  ;;  %v1752_v38 = vcombine.high %v4004_v45, %v4007_v19  ;;  %v2351_v39 = vcombine.low %v3922_v20, %v2126_v22 }
 0x3a6   : > { %2744 = vst.msk [vmem:[%s3981_s27 + $0x14] sm:$0xf] %vm1146_vm1, %v3083_v27  ;;  %2746 = vst.msk [vmem:[%s3981_s27 + $0x1c] sm:$0xf] %vm1146_vm1, %v3085_v29  ;;  %v2352_v40 = vcombine.high %v3922_v20, %v2126_v22  ;;  %v2603_v41 = vcombine.low %v2579_v30, %v2595_v34  ;;  %v2604_v32 = vcombine.high %v2579_v30, %v2595_v34 }
 0x3a7   : > { %v2605_v63 = vcombine.low %v2586_v33, %v2602_v36  ;;  %v2606_v59 = vcombine.high %v2586_v33, %v2602_v36  ;;  %v2350_v42 = vrot.slane %v2336_v7, %v3696_v24  ;;  %v3207_v13 = vpack.i.bf16 %v1752_v38, %v1751_v11 }
 0x3a8   : > { %v2359_v43 = vrot.slane %v2351_v39, %v3696_v24  ;;  %v2366_v20 = vrot.slane %v2352_v40, %v3696_v24  ;;  %v3086_v46 = vpack.c.bf16 %v2603_v41, %v2603_v41  ;;  %v3088_v47 = vpack.c.bf16 %v2604_v32, %v2604_v32 }
 0x3a9   : > { %v3090_v48 = vpack.c.bf16 %v2605_v63, %v2605_v63  ;;  %v3092_v28 = vpack.c.bf16 %v2606_v59, %v2606_v59  ;;  %3208 = vxpose.xlu0.b32.end [2/2] (short) (narrow) %v3207_v13, 16 }
 0x3aa   : > { %v2367_v35 = vcombine.low %v2343_v37, %v2359_v43  ;;  %v2368_v49 = vcombine.high %v2343_v37, %v2359_v43  ;;  %v2383_v51 = vcombine.low %v2350_v42, %v2366_v20  ;;  %v2384_v12 = vcombine.high %v2350_v42, %v2366_v20  ;;  %2747 = vst.msk [vmem:[%s3981_s27 + $0x20] sm:$0xf] %vm1146_vm1, %v3086_v46 }
 0x3ab   : > { %2749 = vst.msk [vmem:[%s3981_s27 + $0x28] sm:$0xf] %vm1146_vm1, %v3088_v47  ;;  %2751 = vst.msk [vmem:[%s3981_s27 + $0x30] sm:$0xf] %vm1146_vm1, %v3090_v48 }
 0x3ac   : > { %2753 = vst.msk [vmem:[%s3981_s27 + $0x38] sm:$0xf] %vm1146_vm1, %v3092_v28  ;;  %v2375_v50 = vrot.slane %v2367_v35, %v3699_v31  ;;  %v2382_v7 = vrot.slane %v2368_v49, %v3699_v31  ;;  %v2391_v45 = vrot.slane %v2383_v51, %v3699_v31  ;;  %v2398_v19 = vrot.slane %v2384_v12, %v3699_v31 }
 0x3ae   : > { %v2607_v11 = vcombine.low %v2375_v50, %v2382_v7  ;;  %v3018_v54 = vcombine.high %v2375_v50, %v2382_v7  ;;  %v2623_v55 = vcombine.low %v2391_v45, %v2398_v19  ;;  %v3019_v6 = vcombine.high %v2391_v45, %v2398_v19 }
 0x3b0   : > { %v2614_v56 = vrot.slane %v2607_v11, %v3696_v24  ;;  %v2622_v57 = vrot.slane %v3018_v54, %v3696_v24  ;;  %v2630_v58 = vrot.slane %v2623_v55, %v3696_v24  ;;  %v2638_v44 = vrot.slane %v3019_v6, %v3696_v24 }
 0x3b2   : > { %v2639_v60 = vcombine.low %v2614_v56, %v2622_v57  ;;  %v2640_v52 = vcombine.high %v2614_v56, %v2622_v57  ;;  %v2655_v61 = vcombine.low %v2630_v58, %v2638_v44  ;;  %v2656_v53 = vcombine.high %v2630_v58, %v2638_v44 }
 0x3b4   : > { %v2647_v62 = vrot.slane %v2639_v60, %v3699_v31  ;;  %v2654_v0 = vrot.slane %v2640_v52, %v3699_v31  ;;  %v2663_v1 = vrot.slane %v2655_v61, %v3699_v31  ;;  %v2670_v8 = vrot.slane %v2656_v53, %v3699_v31 }
 0x3b6   : > { %v2671_v24 = vcombine.low %v2647_v62, %v2663_v1  ;;  %v2672_v10 = vcombine.high %v2647_v62, %v2663_v1  ;;  %v2673_v2 = vcombine.low %v2654_v0, %v2670_v8  ;;  %v2674_v3 = vcombine.high %v2654_v0, %v2670_v8 }
 0x3b8   : > { %v3087_v26 = vpack.c.bf16 %v2671_v24, %v2671_v24  ;;  %v3089_v9 = vpack.c.bf16 %v2672_v10, %v2672_v10  ;;  %v3091_v4 = vpack.c.bf16 %v2673_v2, %v2673_v2  ;;  %v3093_v5 = vpack.c.bf16 %v2674_v3, %v2674_v3 }
 0x3ba   : > { %2748 = vst.msk [vmem:[%s3981_s27 + $0x24] sm:$0xf] %vm1146_vm1, %v3087_v26  ;;  %2750 = vst.msk [vmem:[%s3981_s27 + $0x2c] sm:$0xf] %vm1146_vm1, %v3089_v9 }
 0x3bb   : > { %2752 = vst.msk [vmem:[%s3981_s27 + $0x34] sm:$0xf] %vm1146_vm1, %v3091_v4  ;;  %2754 = vst.msk [vmem:[%s3981_s27 + $0x3c] sm:$0xf] %vm1146_vm1, %v3093_v5 }
 0x3bc   : > { %3324 = shalt.err (!%p3321_p9)
}
 0x3bd   : > { %s3325_s7 = scalar_lea.hbm %s4091_s10, 1024  ;;  %s3329_s19 = scalar_lea.hbm %s4227_s6, 2048 }
 0x3be   : > { %p3326_p1 = scmp.ne.s32.totalorder %s4091_s10, %s3325_s7  ;;  %p3330_p2 = scmp.lt.u32.totalorder %s4091_s10, %s4227_s6 }
 0x3bf   : > { %p3331_p11 = scmp.lt.u32.totalorder %s3329_s19, %s3325_s7  ;;  %p3333_p6 = scmp.lt.u32.totalorder %s3325_s7, %s4091_s10 }
 0x3c0   : > { %p3327_p0 = pnand %p3326_p1, %p3558_p12 }
 0x3c1   : > { %p3332_p4 = por %p3331_p11, %p3330_p2 }
 0x3c2   : > { %p3328_p5 = pneg %p3327_p0 }
 0x3c3   : > { %p3334_p8 = por %p3333_p6, %p3332_p4 }
 0x3c5   : > { %p3335_p10 = pnand %p3334_p8, %p3328_p5 }
 0x3c7   : > { %3338 = shalt.err (!%p3335_p10)
}
 0x3c8   : > { %s3427_s15 = smov 4   ;;  %s4132_s17 = scalar_lea.vmem [#allocation7], %s2948_s8 }
 0x3c9   : > { %3111 = dma.vmem_to_hbm [thread:$0]  (%p3558_p12), %s4093_s20, 1024, %s4091_s10, %s2766_s11, %s3423_s30, %s3423_s30, %s3427_s15  }
 0x3ca   : > { %s2782_s8 = sshll.u32 %s4132_s17, 4  ;;  %s4168_s11 = scalar_lea.hbm %s4226_s5, %s3094_s29  ;;  %s4170_s8 = int_to_ptr.vmem [resolvable:$true] %s2782_s8 }
 0x3cb   : > { %s2761_s7 = scalar_lea.sflag [#allocation4], %s3609_s12  ;;  %s3339_s27 = scalar_lea.vmem %s4170_s8, 1024 }
 0x3cc   : > { %p3340_p13 = scmp.ne.s32.totalorder %s4170_s8, %s3339_s27  ;;  %s3428_s25 = smov [#allocation7]  }
 0x3cd   : > { %s3343_s26 = sshll.u32 %s3428_s25, 4  ;;  %s3344_s26 = int_to_ptr.vmem [resolvable:$false] %s3343_s26 }
 0x3ce   : > { %p3341_p3 = pnand %p3340_p13, %p3558_p12  ;;  %s3345_s29 = scalar_lea.vmem %s3344_s26, 2048 }
 0x3cf   : > { %p3346_p9 = scmp.lt.s32.totalorder %s4170_s8, %s3344_s26  ;;  %p3347_p1 = scmp.lt.s32.totalorder %s3345_s29, %s3339_s27 }
 0x3d0   : > { %p3342_p7 = pneg %p3341_p3 }
 0x3d1   : > { %p3348_p0 = por %p3347_p1, %p3346_p9 }
 0x3d3   : > { %p3349_p5 = pnand %p3348_p0, %p3342_p7 }
 0x3fa   : > { %v3195_v31 = vpop.trf.xlu1  ;;  %v3181_v14 = vpop.trf.xlu0 }
 0x3fb   : > { %v3199_v15 = vunpack.i.h.bf16 %v3195_v31  ;;  %v3196_v16 = vunpack.i.l.bf16 %v3195_v31  ;;  %v3185_v17 = vunpack.i.h.bf16 %v3181_v14  ;;  %v3182_v18 = vunpack.i.l.bf16 %v3181_v14 }
 0x3fd   : > { %v3068_v21 = vpack.c.bf16 %v3199_v15, %v3199_v15  ;;  %v3066_v22 = vpack.c.bf16 %v3196_v16, %v3196_v16  ;;  %v3064_v23 = vpack.c.bf16 %v3185_v17, %v3185_v17  ;;  %v3062_v25 = vpack.c.bf16 %v3182_v18, %v3182_v18 }
 0x3fe   : > { %v3200_v27 = vpop.trf.xlu1  ;;  %v3186_v29 = vpop.trf.xlu0 }
 0x3ff   : > { %2081 = vst.msk [vmem:[%s4132_s17 + $0x18] sm:$0xf] %vm1146_vm1, %v3068_v21  ;;  %2079 = vst.msk [vmem:[%s4132_s17 + $0x10] sm:$0xf] %vm1146_vm1, %v3066_v22  ;;  %v3204_v30 = vunpack.i.h.bf16 %v3200_v27  ;;  %v3201_v33 = vunpack.i.l.bf16 %v3200_v27  ;;  %v3190_v34 = vunpack.i.h.bf16 %v3186_v29  ;;  %v3187_v36 = vunpack.i.l.bf16 %v3186_v29 }
 0x400   : > { %2077 = vst.msk [vmem:[%s4132_s17 + $0x8] sm:$0xf] %vm1146_vm1, %v3064_v23  ;;  %2075 = vst.msk [vmem:[%s4132_s17] sm:$0xf] %vm1146_vm1, %v3062_v25 }
 0x401   : > { %v3069_v37 = vpack.c.bf16 %v3204_v30, %v3204_v30  ;;  %v3067_v38 = vpack.c.bf16 %v3201_v33, %v3201_v33  ;;  %v3065_v39 = vpack.c.bf16 %v3190_v34, %v3190_v34  ;;  %v3063_v40 = vpack.c.bf16 %v3187_v36, %v3187_v36 }
 0x403   : > { %2082 = vst.msk [vmem:[%s4132_s17 + $0x1c] sm:$0xf] %vm1146_vm1, %v3069_v37  ;;  %2080 = vst.msk [vmem:[%s4132_s17 + $0x14] sm:$0xf] %vm1146_vm1, %v3067_v38 }
 0x404   : > { %2078 = vst.msk [vmem:[%s4132_s17 + $0xc] sm:$0xf] %vm1146_vm1, %v3065_v39  ;;  %2076 = vst.msk [vmem:[%s4132_s17 + $0x4] sm:$0xf] %vm1146_vm1, %v3063_v40 }
 0x416   : > { %v3223_v41 = vpop.trf.xlu1 }
 0x417   : > { %v3227_v32 = vunpack.i.h.bf16 %v3223_v41  ;;  %v3224_v63 = vunpack.i.l.bf16 %v3223_v41 }
 0x419   : > { %v3076_v59 = vpack.c.bf16 %v3227_v32, %v3227_v32  ;;  %v3074_v42 = vpack.c.bf16 %v3224_v63, %v3224_v63 }
 0x41a   : > { %v3228_v13 = vpop.trf.xlu1 }
 0x41b   : > { %2089 = vst.msk [vmem:[%s4132_s17 + $0x38] sm:$0xf] %vm1146_vm1, %v3076_v59  ;;  %2087 = vst.msk [vmem:[%s4132_s17 + $0x30] sm:$0xf] %vm1146_vm1, %v3074_v42  ;;  %v3232_v43 = vunpack.i.h.bf16 %v3228_v13  ;;  %v3229_v20 = vunpack.i.l.bf16 %v3228_v13 }
 0x41d   : > { %v3077_v46 = vpack.c.bf16 %v3232_v43, %v3232_v43  ;;  %v3075_v47 = vpack.c.bf16 %v3229_v20, %v3229_v20 }
 0x41f   : > { %2090 = vst.msk [vmem:[%s4132_s17 + $0x3c] sm:$0xf] %vm1146_vm1, %v3077_v46  ;;  %2088 = vst.msk [vmem:[%s4132_s17 + $0x34] sm:$0xf] %vm1146_vm1, %v3075_v47 }
 0x425   : > { %v3209_v48 = vpop.trf.xlu0 }
 0x426   : > { %v3213_v28 = vunpack.i.h.bf16 %v3209_v48  ;;  %v3210_v35 = vunpack.i.l.bf16 %v3209_v48 }
 0x428   : > { %v3072_v49 = vpack.c.bf16 %v3213_v28, %v3213_v28  ;;  %v3070_v51 = vpack.c.bf16 %v3210_v35, %v3210_v35 }
 0x429   : > { %v3214_v12 = vpop.trf.xlu0 }
 0x42a   : > { %2085 = vst.msk [vmem:[%s4132_s17 + $0x28] sm:$0xf] %vm1146_vm1, %v3072_v49  ;;  %2083 = vst.msk [vmem:[%s4132_s17 + $0x20] sm:$0xf] %vm1146_vm1, %v3070_v51  ;;  %v3218_v50 = vunpack.i.h.bf16 %v3214_v12  ;;  %v3215_v7 = vunpack.i.l.bf16 %v3214_v12 }
 0x42c   : > { %v3073_v45 = vpack.c.bf16 %v3218_v50, %v3218_v50  ;;  %v3071_v19 = vpack.c.bf16 %v3215_v7, %v3215_v7 }
 0x42e   : > { %2086 = vst.msk [vmem:[%s4132_s17 + $0x2c] sm:$0xf] %vm1146_vm1, %v3073_v45  ;;  %2084 = vst.msk [vmem:[%s4132_s17 + $0x24] sm:$0xf] %vm1146_vm1, %v3071_v19 }
 0x42f   : > { %3352 = shalt.err (!%p3349_p5)
}
 0x430   : > { %s3353_s19 = scalar_lea.hbm %s4168_s11, 1024  ;;  %s3357_s17 = scalar_lea.hbm %s4226_s5, 2048 }
 0x431   : > { %p3354_p2 = scmp.ne.s32.totalorder %s4168_s11, %s3353_s19  ;;  %p3358_p6 = scmp.lt.u32.totalorder %s4168_s11, %s4226_s5 }
 0x432   : > { %p3359_p8 = scmp.lt.u32.totalorder %s3357_s17, %s3353_s19  ;;  %p3361_p13 = scmp.lt.u32.totalorder %s3353_s19, %s4168_s11 }
 0x433   : > { %p3355_p11 = pnand %p3354_p2, %p3558_p12 }
 0x434   : > { %p3360_p10 = por %p3359_p8, %p3358_p6 }
 0x435   : > { %p3356_p4 = pneg %p3355_p11 }
 0x436   : > { %p3362_p3 = por %p3361_p13, %p3360_p10 }
 0x438   : > { %p3363_p7 = pnand %p3362_p3, %p3356_p4 }
 0x43a   : > { %3366 = shalt.err (!%p3363_p7)
}
 0x43b   : > { %3110 = dma.vmem_to_hbm [thread:$0]  (%p3558_p12), %s4170_s8, 1024, %s4168_s11, %s2761_s7, %s3423_s30, %s3423_s30, %s3427_s15  }
 0x43c PF: > { %s2821_s27 = sand.u32 1, %s3401_s21   ;;  %p4242_p9 = scmp.ne.s32.totalorder %s4232_s28, 0 }
 0x43d   : > { %p4243_p1 = scmp.ge.s32.totalorder %s3413_s24, 2  ;;  %s2822_s25 = scalar_lea.sflag [#allocation4], %s2821_s27 }
 0x43f   : > { %p3123_p0 = pnand %p4243_p1, %p4242_p9 }
 0x441   : > { %3392 = dma.done.wait (!%p3123_p0), %s2822_s25, 1024  }
 0x442   : > { %3394 = vsyncadd (!%p3123_p0), %s2822_s25, 4294966272  ;;  %s2831_s14 = scalar_lea.sflag [#allocation9], %s2821_s27 }
 0x443   : > { %3396 = dma.done.wait (!%p3123_p0), %s2831_s14, 1024  }
 0x444   : > { %3398 = vsyncadd (!%p3123_p0), %s2831_s14, 4294966272  ;;  %p24_p12 = scmp.ge.s32.totalorder %s3520_s9, 4   ;;  %s4244_s21 = smov %s3405_s22 }
 0x445   : > { %s4245_s22 = smov %s3409_s23  ;;  %s4246_s23 = smov %s3554_s13 }
 0x446   : > { %s4247_s24 = smov %s3520_s9  ;;  %26 = sbr.rel (!%p24_p12) target bundleno = 8 (0x8), region = 114 }
 0x44d   :  { %2836 = vsyncpa [#allocation3], 1 }
 0x44e   :  { %2838 = vsyncpa [#allocation3 + $0x1], 1 }
 0x44f   :  { %2839 = vsyncpa [#allocation6], 1 }
 0x450   :  { %2840 = vsyncpa [#allocation4], 1 }
 0x451   :  { %2842 = vsyncpa [#allocation4 + $0x1], 1 }
 0x452   :  { %2843 = vsyncpa [#allocation9], 1 }
 0x453   :  { %2845 = vsyncpa [#allocation9 + $0x1], 1 }

</bundles_post_ra>
